<compile_context>
chip_gen: v6e
topology: v6e:2x2x1
jax: 0.10.0
libtpu: 0.0.40
codegen_flags: <defaults>
</compile_context>

<pallas_src>
import functools

import jax
import jax.numpy as jnp
from jax.experimental import pallas as pl
from jax.experimental.pallas import tpu as pltpu


_ACTIVATIONS = {
    "sigmoid": jax.nn.sigmoid,
    "tanh": jnp.tanh,
    "relu": lambda v: jnp.maximum(v, 0.0),
    "identity": lambda v: v,
}
# TODO(synk): arbitrary user-supplied callables for `f` are not supported inside the
# kernel; only the elementwise activations above are (sigmoid is the GAN default).


def _round_up(x, m):
    return (x + m - 1) // m * m


def _discriminator_kernel(x_ref, w1_ref, b1_ref, w2_ref, b2_ref, w3_ref, b3_ref,
                          o_ref, *, final_act):
    # layer1 + ReLU  (MXU matmul, f32 accumulate; bias/ReLU on VPU in f32)
    h1 = jnp.dot(x_ref[...], w1_ref[...], preferred_element_type=jnp.float32)
    h1 = jnp.maximum(h1 + b1_ref[...], 0.0)

    # layer2 + ReLU
    h2 = jnp.dot(h1.astype(w2_ref.dtype), w2_ref[...],
                 preferred_element_type=jnp.float32)
    h2 = jnp.maximum(h2 + b2_ref[...], 0.0)

    # layer3 + f
    if o_ref.shape[-1] == 1:
        # out_dim == 1: skip the N=1 MXU matmul; VPU multiply + XLU row-reduce.
        # w3 arrives as a (1, n_hidden_2) row.
        w3_row = w3_ref[...].astype(jnp.float32)
        logits = jnp.sum(h2 * w3_row, axis=-1, keepdims=True) + b3_ref[...]
    else:
        logits = jnp.dot(h2.astype(w3_ref.dtype), w3_ref[...],
                         preferred_element_type=jnp.float32) + b3_ref[...]

    o_ref[...] = final_act(logits).astype(o_ref.dtype)


def discriminator_forward(x, params, *, f="sigmoid",
                          compute_dtype=jnp.bfloat16, tile_b=256):
    """x: [batch, in_dim]. params weights are stored pre-transposed as [in, out]."""
    w1, b1 = params["w1"], params["b1"]
    w2, b2 = params["w2"], params["b2"]
    w3, b3 = params["w3"], params["b3"]

    batch, in_dim = x.shape
    n_h1 = w1.shape[1]
    n_h2 = w2.shape[1]
    out_dim = w3.shape[1]
    act_fn = _ACTIVATIONS[f]

    # ---- batch tiling (grid over batch; weights resident) -------------------
    if batch <= 2 * tile_b:
        tb = _round_up(batch, 8)          # single tile (block == full padded dim)
    else:
        tb = tile_b
    padded = _round_up(batch, tb)
    if padded != batch:
        x = jnp.pad(x, ((0, padded - batch), (0, 0)))
    grid = (padded // tb,)

    # ---- operand dtypes: bf16 matmul operands, f32 elementwise path ---------
    c_itemsize = jnp.dtype(compute_dtype).itemsize
    x_c = x.astype(compute_dtype)
    w1_c = w1.astype(compute_dtype)
    w2_c = w2.astype(compute_dtype)
    # For out_dim == 1 the kernel consumes w3 as a (1, n_hidden_2) row (VPU path).
    w3_c = (w3.reshape(1, n_h2) if out_dim == 1 else w3).astype(compute_dtype)
    b1_r = b1.reshape(1, n_h1).astype(jnp.float32)
    b2_r = b2.reshape(1, n_h2).astype(jnp.float32)
    b3_r = b3.reshape(1, out_dim).astype(jnp.float32)

    # ---- VMEM budget (sized against v7x: 64 MiB phys / 32 MiB scoped) -------
    weight_bytes = (in_dim * n_h1 + n_h1 * n_h2 + n_h2 * out_dim) * c_itemsize
    bias_bytes = (n_h1 + n_h2 + out_dim) * 4
    x_tile_bytes = tb * in_dim * c_itemsize
    out_tile_bytes = tb * out_dim * 4
    interm_bytes = tb * (n_h1 + n_h2 + out_dim) * 4
    vmem_est = (2 * (weight_bytes + bias_bytes)      # resident inputs (2 bufs worst case)
                + 2 * x_tile_bytes                   # double-buffered x tile
                + 2 * out_tile_bytes                 # double-buffered out tile
                + 4 * interm_bytes)                  # h1/h2/logits + compiler scratch
    vmem_limit = min(max(int(1.5 * vmem_est), 8 * 1024 * 1024), 48 * 1024 * 1024)

    cost = pl.CostEstimate(
        flops=2 * padded * (in_dim * n_h1 + n_h1 * n_h2 + n_h2 * out_dim),
        transcendentals=padded * out_dim,            # sigmoid exp per output
        bytes_accessed=(padded * in_dim * c_itemsize
                        + weight_bytes + bias_bytes
                        + padded * out_dim * 4),
    )

    kernel = functools.partial(_discriminator_kernel, final_act=act_fn)

    out = pl.pallas_call(
        kernel,
        out_shape=jax.ShapeDtypeStruct((padded, out_dim), jnp.float32),
        grid=grid,
        in_specs=[
            pl.BlockSpec((tb, in_dim), lambda i: (i, 0)),        # x tile (pipelined)
            pl.BlockSpec((in_dim, n_h1), lambda i: (0, 0)),      # w1 (resident)
            pl.BlockSpec((1, n_h1), lambda i: (0, 0)),           # b1
            pl.BlockSpec((n_h1, n_h2), lambda i: (0, 0)),        # w2
            pl.BlockSpec((1, n_h2), lambda i: (0, 0)),           # b2
            pl.BlockSpec(w3_c.shape, lambda i: (0, 0)),          # w3 (row if out_dim==1)
            pl.BlockSpec((1, out_dim), lambda i: (0, 0)),        # b3
        ],
        out_specs=pl.BlockSpec((tb, out_dim), lambda i: (i, 0)),
        compiler_params=pltpu.CompilerParams(
            dimension_semantics=("parallel",),   # shards batch tiles across TCs on v7x
            vmem_limit_bytes=vmem_limit,
        ),
        cost_estimate=cost,
    )(x_c, w1_c, b1_r, w2_c, b2_r, w3_c, b3_r)

    return out[:batch] if padded != batch else out


def init_params(key, in_dim, n_hidden_1, n_hidden_2, out_dim):
    """PyTorch-Linear-style init U(-1/sqrt(fan_in), 1/sqrt(fan_in)).

    Weights are stored pre-transposed as [in, out] so the kernel consumes them
    directly (no per-call transpose).  To import PyTorch [out, in] weights,
    transpose once at load time.
    """
    ks = jax.random.split(key, 6)

    def lin(kw, kb, fan_in, fan_out):
        bound = 1.0 / (fan_in ** 0.5)
        w = jax.random.uniform(kw, (fan_in, fan_out), jnp.float32, -bound, bound)
        b = jax.random.uniform(kb, (fan_out,), jnp.float32, -bound, bound)
        return w, b

    w1, b1 = lin(ks[0], ks[1], in_dim, n_hidden_1)
    w2, b2 = lin(ks[2], ks[3], n_hidden_1, n_hidden_2)
    w3, b3 = lin(ks[4], ks[5], n_hidden_2, out_dim)
    return {"w1": w1, "b1": b1, "w2": w2, "b2": b2, "w3": w3, "b3": b3}


if __name__ == "__main__":
    key = jax.random.PRNGKey(0)
    k_x, k_p = jax.random.split(key)

    # Small but TPU-friendly sizes: hidden dims = 128 (lane-aligned), batch = 512
    # so the batch grid actually has > 1 step (TILE_B = 256).
    batch, in_dim, n_hidden_1, n_hidden_2, out_dim = 512, 128, 128, 128, 1

    x = jax.random.normal(k_x, (batch, in_dim), jnp.float32)
    params = init_params(k_p, in_dim, n_hidden_1, n_hidden_2, out_dim)

    out = discriminator_forward(x, params, f="sigmoid")
    out = jax.block_until_ready(out)

    # Pure-JAX f32 reference (weights already stored [in, out]).
    def ref(x, p):
        h1 = jax.nn.relu(x @ p["w1"] + p["b1"])
        h2 = jax.nn.relu(h1 @ p["w2"] + p["b2"])
        return jax.nn.sigmoid(h2 @ p["w3"] + p["b3"])

    expected = ref(x, params)
    assert out.shape == (batch, out_dim)
    # bf16 matmul operands with f32 accumulation -> relaxed tolerance vs the f32 ref.
    assert jnp.allclose(out, expected, atol=2e-2, rtol=2e-2)

    print("KERNEL_OK")
</pallas_src>

<mosaic_0001>
module attributes {stable_mosaic.version = 11 : i64} {
  func.func @_discriminator_kernel(%arg0: i32, %arg1: memref<512x128xbf16, #tpu.memory_space<vmem>>, %arg2: memref<128x128xbf16, #tpu.memory_space<vmem>>, %arg3: memref<1x128xf32, #tpu.memory_space<vmem>>, %arg4: memref<128x128xbf16, #tpu.memory_space<vmem>>, %arg5: memref<1x128xf32, #tpu.memory_space<vmem>>, %arg6: memref<1x128xbf16, #tpu.memory_space<vmem>>, %arg7: memref<1x1xf32, #tpu.memory_space<vmem>>, %arg8: memref<512x1xf32, #tpu.memory_space<vmem>>) attributes {dimension_semantics = [#tpu.dimension_semantics<parallel>], iteration_bounds = array<i64: 1>, scalar_prefetch = 0 : i64, scratch_operands = 0 : i64, tpu.core_type = #tpu.core_type<tc>, window_params = [{transform_indices = @transform_0, window_bounds = array<i64: 512, 128>}, {pipeline_mode = #tpu.pipeline_mode<synchronous>, transform_indices = @transform_1, window_bounds = array<i64: 128, 128>}, {pipeline_mode = #tpu.pipeline_mode<synchronous>, transform_indices = @transform_2, window_bounds = array<i64: 1, 128>}, {pipeline_mode = #tpu.pipeline_mode<synchronous>, transform_indices = @transform_3, window_bounds = array<i64: 128, 128>}, {pipeline_mode = #tpu.pipeline_mode<synchronous>, transform_indices = @transform_4, window_bounds = array<i64: 1, 128>}, {pipeline_mode = #tpu.pipeline_mode<synchronous>, transform_indices = @transform_5, window_bounds = array<i64: 1, 128>}, {pipeline_mode = #tpu.pipeline_mode<synchronous>, transform_indices = @transform_6, window_bounds = array<i64: 1, 1>}, {transform_indices = @transform_7, window_bounds = array<i64: 512, 1>}]} {
    %c0 = arith.constant 0 : index
    %c0_0 = arith.constant 0 : index
    %0 = vector.load %arg1[%c0, %c0_0] : memref<512x128xbf16, #tpu.memory_space<vmem>>, vector<512x128xbf16>
    %c0_1 = arith.constant 0 : index
    %c0_2 = arith.constant 0 : index
    %1 = vector.load %arg2[%c0_1, %c0_2] : memref<128x128xbf16, #tpu.memory_space<vmem>>, vector<128x128xbf16>
    %cst = arith.constant dense<0.000000e+00> : vector<512x128xf32>
    %2 = tpu.matmul %0, %1, %cst {dimension_numbers = #tpu.dot_dimension_numbers<[1], [0], [0], [1], [0, 0, 1, 1], [], []>} : vector<512x128xbf16>, vector<128x128xbf16>, vector<512x128xf32> -> vector<512x128xf32>
    %c0_3 = arith.constant 0 : index
    %c0_4 = arith.constant 0 : index
    %3 = vector.load %arg3[%c0_3, %c0_4] : memref<1x128xf32, #tpu.memory_space<vmem>>, vector<1x128xf32>
    %4 = vector.broadcast %3 : vector<1x128xf32> to vector<512x128xf32>
    %5 = arith.addf %2, %4 : vector<512x128xf32>
    %cst_5 = arith.constant 0.000000e+00 : f32
    %6 = vector.broadcast %cst_5 : f32 to vector<512x128xf32>
    %7 = arith.maximumf %5, %6 : vector<512x128xf32>
    %8 = arith.truncf %7 : vector<512x128xf32> to vector<512x128xbf16>
    %c0_6 = arith.constant 0 : index
    %c0_7 = arith.constant 0 : index
    %9 = vector.load %arg4[%c0_6, %c0_7] : memref<128x128xbf16, #tpu.memory_space<vmem>>, vector<128x128xbf16>
    %cst_8 = arith.constant dense<0.000000e+00> : vector<512x128xf32>
    %10 = tpu.matmul %8, %9, %cst_8 {dimension_numbers = #tpu.dot_dimension_numbers<[1], [0], [0], [1], [0, 0, 1, 1], [], []>} : vector<512x128xbf16>, vector<128x128xbf16>, vector<512x128xf32> -> vector<512x128xf32>
    %c0_9 = arith.constant 0 : index
    %c0_10 = arith.constant 0 : index
    %11 = vector.load %arg5[%c0_9, %c0_10] : memref<1x128xf32, #tpu.memory_space<vmem>>, vector<1x128xf32>
    %12 = vector.broadcast %11 : vector<1x128xf32> to vector<512x128xf32>
    %13 = arith.addf %10, %12 : vector<512x128xf32>
    %cst_11 = arith.constant 0.000000e+00 : f32
    %14 = vector.broadcast %cst_11 : f32 to vector<512x128xf32>
    %15 = arith.maximumf %13, %14 : vector<512x128xf32>
    %c0_12 = arith.constant 0 : index
    %c0_13 = arith.constant 0 : index
    %16 = vector.load %arg6[%c0_12, %c0_13] : memref<1x128xbf16, #tpu.memory_space<vmem>>, vector<1x128xbf16>
    %17 = arith.extf %16 : vector<1x128xbf16> to vector<1x128xf32>
    %18 = vector.broadcast %17 : vector<1x128xf32> to vector<512x128xf32>
    %19 = arith.mulf %15, %18 : vector<512x128xf32>
    %cst_14 = arith.constant dense<0.000000e+00> : vector<512xf32>
    %20 = vector.multi_reduction <add>, %19, %cst_14 [1] : vector<512x128xf32> to vector<512xf32>
    %21 = vector.shape_cast %20 : vector<512xf32> to vector<512x1xf32>
    %c0_15 = arith.constant 0 : index
    %c0_16 = arith.constant 0 : index
    %22 = vector.load %arg7[%c0_15, %c0_16] : memref<1x1xf32, #tpu.memory_space<vmem>>, vector<1x1xf32>
    %23 = vector.broadcast %22 : vector<1x1xf32> to vector<512x1xf32>
    %24 = arith.addf %21, %23 : vector<512x1xf32>
    %25 = arith.negf %24 : vector<512x1xf32>
    %26 = math.exp %25 : vector<512x1xf32>
    %cst_17 = arith.constant 1.000000e+00 : f32
    %27 = vector.broadcast %cst_17 : f32 to vector<512x1xf32>
    %28 = arith.addf %27, %26 : vector<512x1xf32>
    %29 = arith.divf %27, %28 : vector<512x1xf32>
    %c0_18 = arith.constant 0 : index
    %c0_19 = arith.constant 0 : index
    %30 = vector.load %arg8[%c0_18, %c0_19] : memref<512x1xf32, #tpu.memory_space<vmem>>, vector<512x1xf32>
    tpu.vector_store %arg8[%c0_18, %c0_19], %29 {strides = array<i32>} : memref<512x1xf32, #tpu.memory_space<vmem>>, vector<512x1xf32>,
    return
  }
  func.func @transform_0(%arg0: i32) -> (i32, i32) {
    %c0_i32 = arith.constant 0 : i32
    %c0_i32_0 = arith.constant 0 : i32
    return %arg0, %c0_i32 : i32, i32
  }
  func.func @transform_1(%arg0: i32) -> (i32, i32) {
    %c0_i32 = arith.constant 0 : i32
    %c0_i32_0 = arith.constant 0 : i32
    %c0_i32_1 = arith.constant 0 : i32
    return %c0_i32, %c0_i32_0 : i32, i32
  }
  func.func @transform_2(%arg0: i32) -> (i32, i32) {
    %c0_i32 = arith.constant 0 : i32
    %c0_i32_0 = arith.constant 0 : i32
    %c0_i32_1 = arith.constant 0 : i32
    return %c0_i32, %c0_i32_0 : i32, i32
  }
  func.func @transform_3(%arg0: i32) -> (i32, i32) {
    %c0_i32 = arith.constant 0 : i32
    %c0_i32_0 = arith.constant 0 : i32
    %c0_i32_1 = arith.constant 0 : i32
    return %c0_i32, %c0_i32_0 : i32, i32
  }
  func.func @transform_4(%arg0: i32) -> (i32, i32) {
    %c0_i32 = arith.constant 0 : i32
    %c0_i32_0 = arith.constant 0 : i32
    %c0_i32_1 = arith.constant 0 : i32
    return %c0_i32, %c0_i32_0 : i32, i32
  }
  func.func @transform_5(%arg0: i32) -> (i32, i32) {
    %c0_i32 = arith.constant 0 : i32
    %c0_i32_0 = arith.constant 0 : i32
    %c0_i32_1 = arith.constant 0 : i32
    return %c0_i32, %c0_i32_0 : i32, i32
  }
  func.func @transform_6(%arg0: i32) -> (i32, i32) {
    %c0_i32 = arith.constant 0 : i32
    %c0_i32_0 = arith.constant 0 : i32
    %c0_i32_1 = arith.constant 0 : i32
    return %c0_i32, %c0_i32_0 : i32, i32
  }
  func.func @transform_7(%arg0: i32) -> (i32, i32) {
    %c0_i32 = arith.constant 0 : i32
    %c0_i32_0 = arith.constant 0 : i32
    return %arg0, %c0_i32 : i32, i32
  }
}

</mosaic_0001>

<bundles_post_ra>
// kernel: tpu_custom_call.1
= control target key start
LH: loop header
LB: loop body
LE: loop exit
PB: predicated region body
PF: predicated region fallthrough
CT: control target
= control target key end

     0   :  { %s3244_s0 = inlined_call_operand.hbm [shape: bf16[512,128], index: 0, kind: input, shape index: {}]   ;;  %s3245_s1 = inlined_call_operand.hbm [shape: bf16[128,128], index: 1, kind: input, shape index: {}]   ;;  %s3246_s2 = inlined_call_operand.vmem [shape: f32[1,128], index: 2, kind: input, shape index: {}]   ;;  %s3247_s3 = inlined_call_operand.hbm [shape: bf16[128,128], index: 3, kind: input, shape index: {}]   ;;  %s3248_s4 = inlined_call_operand.vmem [shape: f32[1,128], index: 4, kind: input, shape index: {}]   ;;  %s3249_s5 = inlined_call_operand.vmem [shape: bf16[1,128], index: 5, kind: input, shape index: {}]   ;;  %s3250_s6 = inlined_call_operand.<no memory space> [shape: f32[1,1], index: 6, kind: input, shape index: {}]   ;;  %s3251_s7 = inlined_call_operand.vmem [shape: f32[512,1], index: 7, kind: output, shape index: {}]  }
   0x1   :  { %v12_v0 = vstv %s3250_s6 }
   0x2   :  { %13 = vst [vmem:[#allocation2] sm:$0x1] %v12_v0 }
   0x3   :  { %14 = vsyncpa [#allocation4], 0 }
   0x4   :  { %15 = vsyncpa [#allocation6], 0  ;;  %s2659_s26 = smov [#allocation5]   ;;  %s2660_s28 = smov [#allocation3]  }
   0x5   :  { %s33_s27 = sshll.u32 %s2659_s26, 4  ;;  %s21_s29 = sshll.u32 %s2660_s28, 4  ;;  %s34_s27 = int_to_ptr.vmem [resolvable:$true] %s33_s27  ;;  %s22_s29 = int_to_ptr.vmem [resolvable:$true] %s21_s29 }
   0x6   :  { %s2603_s30 = scalar_lea.vmem %s34_s27, 1024  ;;  %p2608_p1 = scmp.lt.s32.totalorder %s34_s27, %s34_s27 }
   0x7   :  { %p2604_p0 = scmp.ne.s32.totalorder %s34_s27, %s2603_s30  ;;  %p2609_p2 = scmp.lt.s32.totalorder %s2603_s30, %s2603_s30 }
   0x9   :  { %p2610_p3 = por %p2609_p2, %p2608_p1 }
   0xb   :  { %p2611_p4 = pnand %p2610_p3, %p2604_p0 }
   0xd   :  { %2614 = shalt.err (!%p2611_p4)
}
   0xe   :  { %s2661_s8 = smov 64   ;;  %s2662_s9 = smov 4  }
   0xf   :  { %39 = dma.hbm_to_vmem [thread:$0]  %s3245_s1, 1024, %s34_s27, [#allocation6], %s2661_s8, %s2661_s8, %s2662_s9  }
  0x10   :  { %s2623_s11 = scalar_lea.vmem %s22_s29, 4096  ;;  %p2628_p6 = scmp.lt.s32.totalorder %s22_s29, %s22_s29 }
  0x11   :  { %p2624_p5 = scmp.ne.s32.totalorder %s22_s29, %s2623_s11  ;;  %p2629_p7 = scmp.lt.s32.totalorder %s2623_s11, %s2623_s11 }
  0x13   :  { %p2630_p8 = por %p2629_p7, %p2628_p6 }
  0x15   :  { %p2631_p9 = pnand %p2630_p8, %p2624_p5 }
  0x17   :  { %2634 = shalt.err (!%p2631_p9)
}
  0x18   :  { %27 = dma.hbm_to_vmem [thread:$0]  %s3244_s0, 4096, %s22_s29, [#allocation4], %s2661_s8, %s2661_s8, %s2662_s9  }
  0x19   :  { %s2663_s14 = smov [#allocation7]  }
  0x1a   :  { %s47_s15 = sshll.u32 %s2663_s14, 4  ;;  %s48_s15 = int_to_ptr.vmem [resolvable:$true] %s47_s15 }
  0x1b   :  { %s2643_s16 = scalar_lea.vmem %s48_s15, 1024  ;;  %p2648_p11 = scmp.lt.s32.totalorder %s48_s15, %s48_s15 }
  0x1c   :  { %p2644_p10 = scmp.ne.s32.totalorder %s48_s15, %s2643_s16  ;;  %p2649_p12 = scmp.lt.s32.totalorder %s2643_s16, %s2643_s16 }
  0x1e   :  { %p2650_p13 = por %p2649_p12, %p2648_p11 }
  0x20   :  { %p2651_p0 = pnand %p2650_p13, %p2644_p10 }
  0x22   :  { %2654 = shalt.err (!%p2651_p0)
}
  0x23   :  { %53 = dma.hbm_to_vmem [thread:$0]  %s3247_s3, 1024, %s48_s15, [#allocation6], %s2661_s8, %s2661_s8, %s2662_s9  }
  0x24   :  { %2655 = dma.done.wait [#allocation4], 4096  }
  0x25   :  { %2656 = vsyncadd [#allocation4], 4294963200 }
  0x26   :  { %2657 = dma.done.wait [#allocation6], 2048  }
  0x27   :  { %2658 = vsyncadd [#allocation6], 4294965248  ;;  %v2290_v1 = vld [vmem:[#allocation5 + $0x38] sm:$0xff]   ;;  %v2291_v2 = vld [vmem:[#allocation5 + $0x30] sm:$0xff]   ;;  %vm1859_vm0 = vcmask 7168  }
  0x28   :  { %2125 = vmatprep.subr.bf16.mxu0 %v2290_v1  ;;  %v2292_v3 = vld [vmem:[#allocation5 + $0x28] sm:$0xff]   ;;  %v2293_v4 = vld [vmem:[#allocation5 + $0x20] sm:$0xff]   ;;  %v2294_v6 = vld [vmem:[#allocation5 + $0x18] sm:$0xff]  }
  0x29   :  { %2126 = vmatpush3.bf16.msra.mxu0 %v2290_v1  ;;  %v2298_v5 = vld [vmem:[#allocation3] sm:$0xff]   ;;  %v2295_v7 = vld [vmem:[#allocation5 + $0x10] sm:$0xff]   ;;  %v2296_v8 = vld [vmem:[#allocation5 + $0x8] sm:$0xff]  }
  0x2a   :  { %2127 = vmatprep.subr.bf16.mxu0 %v2291_v2  ;;  %2141 = vmatprep.mubr.bf16.mxu0 %v2298_v5  ;;  %v2297_v9 = vld [vmem:[#allocation5] sm:$0xff]   ;;  %v2299_v10 = vld [vmem:[#allocation3 + $0x8] sm:$0xff]   ;;  %v2300_v11 = vld [vmem:[#allocation3 + $0x10] sm:$0xff]  }
  0x2b   :  { %v2301_v12 = vld [vmem:[#allocation3 + $0x18] sm:$0xff]   ;;  %v2302_v13 = vld [vmem:[#allocation3 + $0x20] sm:$0xff]   ;;  %v2331_v15 = vld [vmem:[#allocation7 + $0x30] sm:$0xff]  }
  0x2c   :  { %v2330_v14 = vld [vmem:[#allocation7 + $0x38] sm:$0xff]   ;;  %v2303_v16 = vld [vmem:[#allocation3 + $0x28] sm:$0xff]   ;;  %v2304_v18 = vld [vmem:[#allocation3 + $0x30] sm:$0xff]  }
  0x2d   :  { %2128 = vmatpush3.bf16.msra.mxu0 %v2291_v2  ;;  %2205 = vmatprep.subr.bf16.mxu1 %v2330_v14  ;;  %v2332_v17 = vld [vmem:[#allocation7 + $0x28] sm:$0xff]   ;;  %v2333_v19 = vld [vmem:[#allocation7 + $0x20] sm:$0xff]   ;;  %v2334_v20 = vld [vmem:[#allocation7 + $0x18] sm:$0xff]  }
  0x2e   :  { %2129 = vmatprep.subr.bf16.mxu0 %v2292_v3  ;;  %2206 = vmatpush3.bf16.msra.mxu1 %v2330_v14  ;;  %v2305_v21 = vld [vmem:[#allocation3 + $0x38] sm:$0xff]   ;;  %v2306_v22 = vld [vmem:[#allocation3 + $0x40] sm:$0xff]   ;;  %v2307_v23 = vld [vmem:[#allocation3 + $0x48] sm:$0xff]  }
  0x2f   :  { %2207 = vmatprep.subr.bf16.mxu1 %v2331_v15  ;;  %v2308_v24 = vld [vmem:[#allocation3 + $0x50] sm:$0xff]   ;;  %v2309_v25 = vld [vmem:[#allocation3 + $0x58] sm:$0xff]   ;;  %v2310_v26 = vld [vmem:[#allocation3 + $0x60] sm:$0xff]  }
  0x30   :  { %v2311_v27 = vld [vmem:[#allocation3 + $0x68] sm:$0xff]   ;;  %v2312_v28 = vld [vmem:[#allocation3 + $0x70] sm:$0xff]   ;;  %v2313_v29 = vld [vmem:[#allocation3 + $0x78] sm:$0xff]  }
  0x31   :  { %2130 = vmatpush3.bf16.msra.mxu0 %v2292_v3  ;;  %v2314_v30 = vld [vmem:[#allocation3 + $0x80] sm:$0xff]   ;;  %v2315_v31 = vld [vmem:[#allocation3 + $0x88] sm:$0xff]   ;;  %v2316_v32 = vld [vmem:[#allocation3 + $0x90] sm:$0xff]  }
  0x32   :  { %2131 = vmatprep.subr.bf16.mxu0 %v2293_v4  ;;  %2208 = vmatpush3.bf16.msra.mxu1 %v2331_v15  ;;  %v2335_v33 = vld [vmem:[#allocation7 + $0x10] sm:$0xff]   ;;  %v2317_v34 = vld [vmem:[#allocation3 + $0x98] sm:$0xff]   ;;  %v2336_v35 = vld [vmem:[#allocation7 + $0x8] sm:$0xff]  }
  0x33   :  { %2209 = vmatprep.subr.bf16.mxu1 %v2332_v17  ;;  %v2318_v36 = vld [vmem:[#allocation3 + $0xa0] sm:$0xff]   ;;  %v2319_v38 = vld [vmem:[#allocation3 + $0xa8] sm:$0xff]   ;;  %v2320_v39 = vld [vmem:[#allocation3 + $0xb0] sm:$0xff]  }
  0x34   :  { %v2337_v37 = vld [vmem:[#allocation7] sm:$0xff]   ;;  %v2321_v40 = vld [vmem:[#allocation3 + $0xb8] sm:$0xff]   ;;  %v2323_v42 = vld [vmem:[#allocation3 + $0xc8] sm:$0xff]  }
  0x35   :  { %2132 = vmatpush3.bf16.msra.mxu0 %v2293_v4  ;;  %v2322_v41 = vld [vmem:[#allocation3 + $0xc0] sm:$0xff]   ;;  %v2324_v43 = vld [vmem:[#allocation3 + $0xd0] sm:$0xff]   ;;  %v2325_v44 = vld [vmem:[#allocation3 + $0xd8] sm:$0xff]  }
  0x36   :  { %2133 = vmatprep.subr.bf16.mxu0 %v2294_v6  ;;  %2210 = vmatpush3.bf16.msra.mxu1 %v2332_v17  ;;  %v2326_v45 = vld [vmem:[#allocation3 + $0xe0] sm:$0xff]   ;;  %v2327_v46 = vld [vmem:[#allocation3 + $0xe8] sm:$0xff]   ;;  %v2328_v47 = vld [vmem:[#allocation3 + $0xf0] sm:$0xff]  }
  0x37   :  { %2211 = vmatprep.subr.bf16.mxu1 %v2333_v19  ;;  %v2329_v48 = vld [vmem:[#allocation3 + $0xf8] sm:$0xff]  }
  0x38   :  { %v2719_v51 = vld [vmem:[%s3246_s2] ss:$0 sm:$0xff] }
  0x39   :  { %2134 = vmatpush3.bf16.msra.mxu0 %v2294_v6 }
  0x3a   :  { %2135 = vmatprep.subr.bf16.mxu0 %v2295_v7  ;;  %2212 = vmatpush3.bf16.msra.mxu1 %v2333_v19 }
  0x3b   :  { %2213 = vmatprep.subr.bf16.mxu1 %v2334_v20 }
  0x3d   :  { %2136 = vmatpush3.bf16.msra.mxu0 %v2295_v7 }
  0x3e   :  { %2137 = vmatprep.subr.bf16.mxu0 %v2296_v8  ;;  %2214 = vmatpush3.bf16.msra.mxu1 %v2334_v20 }
  0x3f   :  { %2215 = vmatprep.subr.bf16.mxu1 %v2335_v33 }
  0x41   :  { %2138 = vmatpush3.bf16.msra.mxu0 %v2296_v8 }
  0x42   :  { %2139 = vmatprep.subr.bf16.mxu0 %v2297_v9  ;;  %2216 = vmatpush3.bf16.msra.mxu1 %v2335_v33 }
  0x43   :  { %2217 = vmatprep.subr.bf16.mxu1 %v2336_v35 }
  0x45   :  { %2140 = vmatpush3.bf16.msra.mxu0 %v2297_v9 }
  0x46   :  { %2218 = vmatpush3.bf16.msra.mxu1 %v2336_v35 }
  0x47   :  { %2219 = vmatprep.subr.bf16.mxu1 %v2337_v37 }
  0x48   :  { %2142 = vmatmul.mubr.bf16.vlgmr.msra.gmra.mxu0 %v2299_v10 }
  0x49   :  { %2145 = vmatprep.mubr.bf16.mxu0 %v2300_v11 }
  0x4a   :  { %2220 = vmatpush3.bf16.msra.mxu1 %v2337_v37 }
  0x50   :  { %2146 = vmatmul.mubr.bf16.gmra.mxu0 %v2301_v12 }
  0x51   :  { %2149 = vmatprep.mubr.bf16.mxu0 %v2302_v13 }
  0x58   :  { %2150 = vmatmul.mubr.bf16.gmra.mxu0 %v2303_v16 }
  0x59   :  { %2153 = vmatprep.mubr.bf16.mxu0 %v2304_v18 }
  0x60   :  { %2154 = vmatmul.mubr.bf16.gmra.mxu0 %v2305_v21 }
  0x61   :  { %2157 = vmatprep.mubr.bf16.mxu0 %v2306_v22 }
  0x68   :  { %2158 = vmatmul.mubr.bf16.gmra.mxu0 %v2307_v23 }
  0x69   :  { %2161 = vmatprep.mubr.bf16.mxu0 %v2308_v24 }
  0x70   :  { %2162 = vmatmul.mubr.bf16.gmra.mxu0 %v2309_v25 }
  0x71   :  { %2165 = vmatprep.mubr.bf16.mxu0 %v2310_v26 }
  0x78   :  { %2166 = vmatmul.mubr.bf16.gmra.mxu0 %v2311_v27 }
  0x79   :  { %2169 = vmatprep.mubr.bf16.mxu0 %v2312_v28 }
  0x80   :  { %2170 = vmatmul.mubr.bf16.gmra.mxu0 %v2313_v29 }
  0x81   :  { %2173 = vmatprep.mubr.bf16.mxu0 %v2314_v30 }
  0x88   :  { %2174 = vmatmul.mubr.bf16.gmra.mxu0 %v2315_v31 }
  0x89   :  { %2177 = vmatprep.mubr.bf16.mxu0 %v2316_v32 }
  0x90   :  { %2178 = vmatmul.mubr.bf16.gmra.mxu0 %v2317_v34 }
  0x91   :  { %2181 = vmatprep.mubr.bf16.mxu0 %v2318_v36 }
  0x98   :  { %2182 = vmatmul.mubr.bf16.gmra.mxu0 %v2319_v38 }
  0x99   :  { %2185 = vmatprep.mubr.bf16.mxu0 %v2320_v39 }
  0xa0   :  { %2186 = vmatmul.mubr.bf16.gmra.mxu0 %v2321_v40 }
  0xa1   :  { %2189 = vmatprep.mubr.bf16.mxu0 %v2322_v41 }
  0xa8   :  { %2190 = vmatmul.mubr.bf16.gmra.mxu0 %v2323_v42 }
  0xa9   :  { %2193 = vmatprep.mubr.bf16.mxu0 %v2324_v43 }
  0xb0   :  { %2194 = vmatmul.mubr.bf16.gmra.mxu0 %v2325_v44 }
  0xb1   :  { %2197 = vmatprep.mubr.bf16.mxu0 %v2326_v45 }
  0xb8   :  { %2198 = vmatmul.mubr.bf16.gmra.mxu0 %v2327_v46 }
  0xb9   :  { %2201 = vmatprep.mubr.bf16.mxu0 %v2328_v47 }
  0xc0   :  { %2202 = vmatmul.mubr.bf16.gmra.mxu0 %v2329_v48 }
 0x108   :  { %v2143_v49 = vpop.f32.mrf.mxu0 }
 0x109   :  { %v440_v55 = vadd.f32 %v2143_v49, %v2719_v51 }
 0x10a   :  { %v431_v50 = vpop.f32.mrf.mxu0 }
 0x10b   :  { %v432_v53 = vadd.f32 %v2719_v51, %v431_v50  ;;  %v688_v62 = vmax.f32 %v440_v55, 0.0 }
 0x10c   :  { %v2144_v52 = vpop.f32.mrf.mxu0 }
 0x10d   :  { %v443_v54 = vadd.f32 %v2144_v52, %v2719_v51  ;;  %v686_v60 = vmax.f32 %v432_v53, 0.0 }
 0x10e   :  { %v434_v56 = vpop.f32.mrf.mxu0 }
 0x10f   :  { %v435_v57 = vadd.f32 %v2719_v51, %v434_v56  ;;  %v689_v58 = vmax.f32 %v443_v54, 0.0 }
 0x110   :  { %v2147_v59 = vpop.f32.mrf.mxu0 }
 0x111   :  { %v687_v61 = vmax.f32 %v435_v57, 0.0  ;;  %v751_v1 = vpack.c.bf16 %v689_v58, %v688_v62  ;;  %v456_v5 = vadd.f32 %v2147_v59, %v2719_v51 }
 0x112   :  { %v447_v63 = vpop.f32.mrf.mxu0 }
 0x113   :  { %v750_v0 = vpack.c.bf16 %v687_v61, %v686_v60  ;;  %v448_v3 = vadd.f32 %v2719_v51, %v447_v63  ;;  %v692_v12 = vmax.f32 %v456_v5, 0.0 }
 0x114   :  { %v2148_v2 = vpop.f32.mrf.mxu0 }
 0x115   :  { %v459_v4 = vadd.f32 %v2148_v2, %v2719_v51  ;;  %2221 = vmatprep.mubr.bf16.mxu1 %v750_v0  ;;  %v690_v10 = vmax.f32 %v448_v3, 0.0 }
 0x116   :  { %v450_v6 = vpop.f32.mrf.mxu0  ;;  %2222 = vmatmul.mubr.bf16.vlgmr.msra.gmra.mxu1 %v751_v1 }
 0x117   :  { %v451_v7 = vadd.f32 %v2719_v51, %v450_v6  ;;  %v693_v8 = vmax.f32 %v459_v4, 0.0 }
 0x118   :  { %v2151_v9 = vpop.f32.mrf.mxu0 }
 0x119   :  { %v691_v11 = vmax.f32 %v451_v7, 0.0  ;;  %v753_v15 = vpack.c.bf16 %v693_v8, %v692_v12  ;;  %v472_v19 = vadd.f32 %v2151_v9, %v2719_v51 }
 0x11a   :  { %v463_v13 = vpop.f32.mrf.mxu0 }
 0x11b   :  { %v752_v14 = vpack.c.bf16 %v691_v11, %v690_v10  ;;  %v464_v17 = vadd.f32 %v2719_v51, %v463_v13  ;;  %v696_v26 = vmax.f32 %v472_v19, 0.0 }
 0x11c   :  { %v2152_v16 = vpop.f32.mrf.mxu0 }
 0x11d   :  { %v475_v18 = vadd.f32 %v2152_v16, %v2719_v51  ;;  %2225 = vmatprep.mubr.bf16.mxu1 %v752_v14  ;;  %v694_v24 = vmax.f32 %v464_v17, 0.0 }
 0x11e   :  { %v466_v20 = vpop.f32.mrf.mxu0  ;;  %2226 = vmatmul.mubr.bf16.gmra.mxu1 %v753_v15 }
 0x11f   :  { %v467_v21 = vadd.f32 %v2719_v51, %v466_v20  ;;  %v697_v22 = vmax.f32 %v475_v18, 0.0 }
 0x120   :  { %v2155_v23 = vpop.f32.mrf.mxu0 }
 0x121   :  { %v695_v25 = vmax.f32 %v467_v21, 0.0  ;;  %v755_v29 = vpack.c.bf16 %v697_v22, %v696_v26  ;;  %v488_v33 = vadd.f32 %v2155_v23, %v2719_v51 }
 0x122   :  { %v479_v27 = vpop.f32.mrf.mxu0 }
 0x123   :  { %v754_v28 = vpack.c.bf16 %v695_v25, %v694_v24  ;;  %v480_v31 = vadd.f32 %v2719_v51, %v479_v27  ;;  %v700_v40 = vmax.f32 %v488_v33, 0.0 }
 0x124   :  { %v2156_v30 = vpop.f32.mrf.mxu0 }
 0x125   :  { %v491_v32 = vadd.f32 %v2156_v30, %v2719_v51  ;;  %2229 = vmatprep.mubr.bf16.mxu1 %v754_v28  ;;  %v698_v38 = vmax.f32 %v480_v31, 0.0 }
 0x126   :  { %v482_v34 = vpop.f32.mrf.mxu0  ;;  %2230 = vmatmul.mubr.bf16.gmra.mxu1 %v755_v29 }
 0x127   :  { %v483_v35 = vadd.f32 %v2719_v51, %v482_v34  ;;  %v701_v36 = vmax.f32 %v491_v32, 0.0 }
 0x128   :  { %v2159_v37 = vpop.f32.mrf.mxu0 }
 0x129   :  { %v699_v39 = vmax.f32 %v483_v35, 0.0  ;;  %v757_v43 = vpack.c.bf16 %v701_v36, %v700_v40  ;;  %v504_v47 = vadd.f32 %v2159_v37, %v2719_v51 }
 0x12a   :  { %v495_v41 = vpop.f32.mrf.mxu0 }
 0x12b   :  { %v756_v42 = vpack.c.bf16 %v699_v39, %v698_v38  ;;  %v496_v45 = vadd.f32 %v2719_v51, %v495_v41  ;;  %v704_v55 = vmax.f32 %v504_v47, 0.0 }
 0x12c   :  { %v2160_v44 = vpop.f32.mrf.mxu0 }
 0x12d   :  { %v507_v46 = vadd.f32 %v2160_v44, %v2719_v51  ;;  %2233 = vmatprep.mubr.bf16.mxu1 %v756_v42  ;;  %v702_v53 = vmax.f32 %v496_v45, 0.0 }
 0x12e   :  { %v498_v48 = vpop.f32.mrf.mxu0  ;;  %2234 = vmatmul.mubr.bf16.gmra.mxu1 %v757_v43 }
 0x12f   :  { %v499_v49 = vadd.f32 %v2719_v51, %v498_v48  ;;  %v705_v50 = vmax.f32 %v507_v46, 0.0 }
 0x130   :  { %v2163_v52 = vpop.f32.mrf.mxu0 }
 0x131   :  { %v703_v54 = vmax.f32 %v499_v49, 0.0  ;;  %v759_v58 = vpack.c.bf16 %v705_v50, %v704_v55  ;;  %v520_v62 = vadd.f32 %v2163_v52, %v2719_v51 }
 0x132   :  { %v511_v56 = vpop.f32.mrf.mxu0 }
 0x133   :  { %v758_v57 = vpack.c.bf16 %v703_v54, %v702_v53  ;;  %v512_v60 = vadd.f32 %v2719_v51, %v511_v56  ;;  %v708_v5 = vmax.f32 %v520_v62, 0.0 }
 0x134   :  { %v2164_v59 = vpop.f32.mrf.mxu0 }
 0x135   :  { %v523_v61 = vadd.f32 %v2164_v59, %v2719_v51  ;;  %2237 = vmatprep.mubr.bf16.mxu1 %v758_v57  ;;  %v706_v3 = vmax.f32 %v512_v60, 0.0 }
 0x136   :  { %v514_v63 = vpop.f32.mrf.mxu0  ;;  %2238 = vmatmul.mubr.bf16.gmra.mxu1 %v759_v58 }
 0x137   :  { %v515_v0 = vadd.f32 %v2719_v51, %v514_v63  ;;  %v709_v1 = vmax.f32 %v523_v61, 0.0 }
 0x138   :  { %v2167_v2 = vpop.f32.mrf.mxu0 }
 0x139   :  { %v707_v4 = vmax.f32 %v515_v0, 0.0  ;;  %v761_v8 = vpack.c.bf16 %v709_v1, %v708_v5  ;;  %v536_v12 = vadd.f32 %v2167_v2, %v2719_v51 }
 0x13a   :  { %v527_v6 = vpop.f32.mrf.mxu0 }
 0x13b   :  { %v760_v7 = vpack.c.bf16 %v707_v4, %v706_v3  ;;  %v528_v10 = vadd.f32 %v2719_v51, %v527_v6  ;;  %v712_v19 = vmax.f32 %v536_v12, 0.0 }
 0x13c   :  { %v2168_v9 = vpop.f32.mrf.mxu0 }
 0x13d   :  { %v539_v11 = vadd.f32 %v2168_v9, %v2719_v51  ;;  %2241 = vmatprep.mubr.bf16.mxu1 %v760_v7  ;;  %v710_v17 = vmax.f32 %v528_v10, 0.0 }
 0x13e   :  { %v530_v13 = vpop.f32.mrf.mxu0  ;;  %2242 = vmatmul.mubr.bf16.gmra.mxu1 %v761_v8 }
 0x13f   :  { %v531_v14 = vadd.f32 %v2719_v51, %v530_v13  ;;  %v713_v15 = vmax.f32 %v539_v11, 0.0 }
 0x140   :  { %v2171_v16 = vpop.f32.mrf.mxu0 }
 0x141   :  { %v711_v18 = vmax.f32 %v531_v14, 0.0  ;;  %v763_v22 = vpack.c.bf16 %v713_v15, %v712_v19  ;;  %v552_v26 = vadd.f32 %v2171_v16, %v2719_v51 }
 0x142   :  { %v543_v20 = vpop.f32.mrf.mxu0 }
 0x143   :  { %v762_v21 = vpack.c.bf16 %v711_v18, %v710_v17  ;;  %v544_v24 = vadd.f32 %v2719_v51, %v543_v20  ;;  %v716_v33 = vmax.f32 %v552_v26, 0.0 }
 0x144   :  { %v2172_v23 = vpop.f32.mrf.mxu0 }
 0x145   :  { %v555_v25 = vadd.f32 %v2172_v23, %v2719_v51  ;;  %2245 = vmatprep.mubr.bf16.mxu1 %v762_v21  ;;  %v714_v31 = vmax.f32 %v544_v24, 0.0 }
 0x146   :  { %v546_v27 = vpop.f32.mrf.mxu0  ;;  %2246 = vmatmul.mubr.bf16.gmra.mxu1 %v763_v22 }
 0x147   :  { %v547_v28 = vadd.f32 %v2719_v51, %v546_v27  ;;  %v717_v29 = vmax.f32 %v555_v25, 0.0 }
 0x148   :  { %v2175_v30 = vpop.f32.mrf.mxu0 }
 0x149   :  { %v715_v32 = vmax.f32 %v547_v28, 0.0  ;;  %v765_v36 = vpack.c.bf16 %v717_v29, %v716_v33  ;;  %v568_v40 = vadd.f32 %v2175_v30, %v2719_v51 }
 0x14a   :  { %v559_v34 = vpop.f32.mrf.mxu0 }
 0x14b   :  { %v764_v35 = vpack.c.bf16 %v715_v32, %v714_v31  ;;  %v560_v38 = vadd.f32 %v2719_v51, %v559_v34  ;;  %v720_v47 = vmax.f32 %v568_v40, 0.0 }
 0x14c   :  { %v2176_v37 = vpop.f32.mrf.mxu0 }
 0x14d   :  { %v571_v39 = vadd.f32 %v2176_v37, %v2719_v51  ;;  %2249 = vmatprep.mubr.bf16.mxu1 %v764_v35  ;;  %v718_v45 = vmax.f32 %v560_v38, 0.0 }
 0x14e   :  { %v562_v41 = vpop.f32.mrf.mxu0  ;;  %2250 = vmatmul.mubr.bf16.gmra.mxu1 %v765_v36 }
 0x14f   :  { %v563_v42 = vadd.f32 %v2719_v51, %v562_v41  ;;  %v721_v43 = vmax.f32 %v571_v39, 0.0 }
 0x150   :  { %v2179_v44 = vpop.f32.mrf.mxu0 }
 0x151   :  { %v719_v46 = vmax.f32 %v563_v42, 0.0  ;;  %v767_v50 = vpack.c.bf16 %v721_v43, %v720_v47  ;;  %v584_v55 = vadd.f32 %v2179_v44, %v2719_v51 }
 0x152   :  { %v575_v48 = vpop.f32.mrf.mxu0 }
 0x153   :  { %v766_v49 = vpack.c.bf16 %v719_v46, %v718_v45  ;;  %v576_v53 = vadd.f32 %v2719_v51, %v575_v48  ;;  %v724_v62 = vmax.f32 %v584_v55, 0.0 }
 0x154   :  { %v2180_v52 = vpop.f32.mrf.mxu0 }
 0x155   :  { %v587_v54 = vadd.f32 %v2180_v52, %v2719_v51  ;;  %2253 = vmatprep.mubr.bf16.mxu1 %v766_v49  ;;  %v722_v60 = vmax.f32 %v576_v53, 0.0 }
 0x156   :  { %v578_v56 = vpop.f32.mrf.mxu0  ;;  %2254 = vmatmul.mubr.bf16.gmra.mxu1 %v767_v50 }
 0x157   :  { %v579_v57 = vadd.f32 %v2719_v51, %v578_v56  ;;  %v725_v58 = vmax.f32 %v587_v54, 0.0 }
 0x158   :  { %v2183_v59 = vpop.f32.mrf.mxu0 }
 0x159   :  { %v723_v61 = vmax.f32 %v579_v57, 0.0  ;;  %v769_v1 = vpack.c.bf16 %v725_v58, %v724_v62  ;;  %v600_v5 = vadd.f32 %v2183_v59, %v2719_v51 }
 0x15a   :  { %v591_v63 = vpop.f32.mrf.mxu0 }
 0x15b   :  { %v768_v0 = vpack.c.bf16 %v723_v61, %v722_v60  ;;  %v592_v3 = vadd.f32 %v2719_v51, %v591_v63  ;;  %v728_v12 = vmax.f32 %v600_v5, 0.0 }
 0x15c   :  { %v2184_v2 = vpop.f32.mrf.mxu0 }
 0x15d   :  { %v603_v4 = vadd.f32 %v2184_v2, %v2719_v51  ;;  %2257 = vmatprep.mubr.bf16.mxu1 %v768_v0  ;;  %v726_v10 = vmax.f32 %v592_v3, 0.0 }
 0x15e   :  { %v594_v6 = vpop.f32.mrf.mxu0  ;;  %2258 = vmatmul.mubr.bf16.gmra.mxu1 %v769_v1 }
 0x15f   :  { %v595_v7 = vadd.f32 %v2719_v51, %v594_v6  ;;  %v729_v8 = vmax.f32 %v603_v4, 0.0 }
 0x160   :  { %v2187_v9 = vpop.f32.mrf.mxu0 }
 0x161   :  { %v727_v11 = vmax.f32 %v595_v7, 0.0  ;;  %v771_v15 = vpack.c.bf16 %v729_v8, %v728_v12  ;;  %v616_v19 = vadd.f32 %v2187_v9, %v2719_v51 }
 0x162   :  { %v607_v13 = vpop.f32.mrf.mxu0 }
 0x163   :  { %v770_v14 = vpack.c.bf16 %v727_v11, %v726_v10  ;;  %v608_v17 = vadd.f32 %v2719_v51, %v607_v13  ;;  %v732_v26 = vmax.f32 %v616_v19, 0.0 }
 0x164   :  { %v2188_v16 = vpop.f32.mrf.mxu0 }
 0x165   :  { %v619_v18 = vadd.f32 %v2188_v16, %v2719_v51  ;;  %2261 = vmatprep.mubr.bf16.mxu1 %v770_v14  ;;  %v730_v24 = vmax.f32 %v608_v17, 0.0 }
 0x166   :  { %v610_v20 = vpop.f32.mrf.mxu0  ;;  %2262 = vmatmul.mubr.bf16.gmra.mxu1 %v771_v15 }
 0x167   :  { %v611_v21 = vadd.f32 %v2719_v51, %v610_v20  ;;  %v733_v22 = vmax.f32 %v619_v18, 0.0 }
 0x168   :  { %v2191_v23 = vpop.f32.mrf.mxu0 }
 0x169   :  { %v731_v25 = vmax.f32 %v611_v21, 0.0  ;;  %v773_v29 = vpack.c.bf16 %v733_v22, %v732_v26  ;;  %v632_v33 = vadd.f32 %v2191_v23, %v2719_v51  ;;  %v1208_v21 = vlaneseq  ;;  %v1206_v23 = vld [vmem:[%s3249_s5] sm:$0x1] }
 0x16a   :  { %v623_v27 = vpop.f32.mrf.mxu0 }
 0x16b   :  { %v772_v28 = vpack.c.bf16 %v731_v25, %v730_v24  ;;  %v624_v31 = vadd.f32 %v2719_v51, %v623_v27  ;;  %v736_v40 = vmax.f32 %v632_v33, 0.0  ;;  %v1209_v22 = vshrl.u32 %v1208_v21, 7 }
 0x16c   :  { %v2192_v30 = vpop.f32.mrf.mxu0  ;;  %v1207_v24 = vunpack.c.l.bf16 %v1206_v23 }
 0x16d   :  { %v635_v32 = vadd.f32 %v2192_v30, %v2719_v51  ;;  %2265 = vmatprep.mubr.bf16.mxu1 %v772_v28  ;;  %v734_v38 = vmax.f32 %v624_v31, 0.0  ;;  %v1210_v25 = vsub.s32 0, %v1209_v22 }
 0x16e   :  { %v626_v34 = vpop.f32.mrf.mxu0  ;;  %2266 = vmatmul.mubr.bf16.gmra.mxu1 %v773_v29 }
 0x16f   :  { %v627_v35 = vadd.f32 %v2719_v51, %v626_v34  ;;  %v737_v36 = vmax.f32 %v635_v32, 0.0  ;;  %v2794_v28 = vrot.slane %v1207_v24, %v1210_v25 }
 0x170   :  { %v2195_v37 = vpop.f32.mrf.mxu0 }
 0x171   :  { %v735_v39 = vmax.f32 %v627_v35, 0.0  ;;  %v775_v43 = vpack.c.bf16 %v737_v36, %v736_v40  ;;  %v648_v47 = vadd.f32 %v2195_v37, %v2719_v51 }
 0x172   :  { %v639_v41 = vpop.f32.mrf.mxu0 }
 0x173   :  { %v774_v42 = vpack.c.bf16 %v735_v39, %v734_v38  ;;  %v640_v45 = vadd.f32 %v2719_v51, %v639_v41  ;;  %v740_v55 = vmax.f32 %v648_v47, 0.0 }
 0x174   :  { %v2196_v44 = vpop.f32.mrf.mxu0 }
 0x175   :  { %v651_v46 = vadd.f32 %v2196_v44, %v2719_v51  ;;  %2269 = vmatprep.mubr.bf16.mxu1 %v774_v42  ;;  %v738_v53 = vmax.f32 %v640_v45, 0.0 }
 0x176   :  { %v642_v48 = vpop.f32.mrf.mxu0  ;;  %2270 = vmatmul.mubr.bf16.gmra.mxu1 %v775_v43 }
 0x177   :  { %v643_v49 = vadd.f32 %v2719_v51, %v642_v48  ;;  %v741_v50 = vmax.f32 %v651_v46, 0.0 }
 0x178   :  { %v2199_v52 = vpop.f32.mrf.mxu0 }
 0x179   :  { %v739_v54 = vmax.f32 %v643_v49, 0.0  ;;  %v777_v58 = vpack.c.bf16 %v741_v50, %v740_v55  ;;  %v664_v62 = vadd.f32 %v2199_v52, %v2719_v51 }
 0x17a   :  { %v655_v56 = vpop.f32.mrf.mxu0 }
 0x17b   :  { %v776_v57 = vpack.c.bf16 %v739_v54, %v738_v53  ;;  %v656_v60 = vadd.f32 %v2719_v51, %v655_v56  ;;  %v744_v5 = vmax.f32 %v664_v62, 0.0 }
 0x17c   :  { %v2200_v59 = vpop.f32.mrf.mxu0 }
 0x17d   :  { %v667_v61 = vadd.f32 %v2200_v59, %v2719_v51  ;;  %2273 = vmatprep.mubr.bf16.mxu1 %v776_v57  ;;  %v742_v3 = vmax.f32 %v656_v60, 0.0 }
 0x17e   :  { %v658_v63 = vpop.f32.mrf.mxu0  ;;  %2274 = vmatmul.mubr.bf16.gmra.mxu1 %v777_v58 }
 0x17f   :  { %v659_v0 = vadd.f32 %v2719_v51, %v658_v63  ;;  %v745_v1 = vmax.f32 %v667_v61, 0.0 }
 0x180   :  { %v2203_v2 = vpop.f32.mrf.mxu0 }
 0x181   :  { %v743_v4 = vmax.f32 %v659_v0, 0.0  ;;  %v779_v8 = vpack.c.bf16 %v745_v1, %v744_v5  ;;  %v680_v12 = vadd.f32 %v2203_v2, %v2719_v51 }
 0x182   :  { %v671_v6 = vpop.f32.mrf.mxu0 }
 0x183   :  { %v778_v7 = vpack.c.bf16 %v743_v4, %v742_v3  ;;  %v672_v10 = vadd.f32 %v2719_v51, %v671_v6  ;;  %v748_v18 = vmax.f32 %v680_v12, 0.0 }
 0x184   :  { %v2204_v9 = vpop.f32.mrf.mxu0 }
 0x185   :  { %v683_v11 = vadd.f32 %v2204_v9, %v2719_v51  ;;  %2277 = vmatprep.mubr.bf16.mxu1 %v778_v7  ;;  %v746_v16 = vmax.f32 %v672_v10, 0.0 }
 0x186   :  { %v674_v13 = vpop.f32.mrf.mxu0  ;;  %2278 = vmatmul.mubr.bf16.gmra.mxu1 %v779_v8 }
 0x187   :  { %v675_v14 = vadd.f32 %v2719_v51, %v674_v13  ;;  %v749_v15 = vmax.f32 %v683_v11, 0.0  ;;  %v2791_v51 = vld [vmem:[%s3248_s4] ss:$0 sm:$0xff] }
 0x189   :  { %v747_v17 = vmax.f32 %v675_v14, 0.0  ;;  %v781_v20 = vpack.c.bf16 %v749_v15, %v748_v18 }
 0x18b   :  { %v780_v19 = vpack.c.bf16 %v747_v17, %v746_v16 }
 0x18d   :  { %2281 = vmatprep.mubr.bf16.mxu1 %v780_v19 }
 0x18e   :  { %2282 = vmatmul.mubr.bf16.gmra.mxu1 %v781_v20 }
 0x1d6   :  { %v2223_v26 = vpop.f32.mrf.mxu1 }
 0x1d7   :  { %v896_v27 = vadd.f32 %v2223_v26, %v2791_v51 }
 0x1d8   :  { %v887_v29 = vpop.f32.mrf.mxu1 }
 0x1d9   :  { %v1144_v30 = vmax.f32 %v896_v27, 0.0  ;;  %v888_v31 = vadd.f32 %v2791_v51, %v887_v29 }
 0x1da   :  { %v2224_v32 = vpop.f32.mrf.mxu1 }
 0x1db   :  { %v1142_v33 = vmax.f32 %v888_v31, 0.0  ;;  %v899_v34 = vadd.f32 %v2224_v32, %v2791_v51  ;;  %v1214_v35 = vmul.f32 %v2794_v28, %v1144_v30 }
 0x1dc   :  { %v890_v36 = vpop.f32.mrf.mxu1 }
 0x1dd   :  { %v1145_v37 = vmax.f32 %v899_v34, 0.0  ;;  %v891_v38 = vadd.f32 %v2791_v51, %v890_v36  ;;  %1280 = vadd.xlane.f32.xlu1 %v1214_v35  ;;  %v1212_v39 = vmul.f32 %v2794_v28, %v1142_v33 }
 0x1de   :  { %v2227_v40 = vpop.f32.mrf.mxu1 }
 0x1df   :  { %v1143_v41 = vmax.f32 %v891_v38, 0.0  ;;  %v912_v42 = vadd.f32 %v2227_v40, %v2791_v51  ;;  %1276 = vadd.xlane.f32.xlu0 %v1212_v39  ;;  %v1215_v43 = vmul.f32 %v2794_v28, %v1145_v37 }
 0x1e0   :  { %v903_v44 = vpop.f32.mrf.mxu1 }
 0x1e1   :  { %v1148_v45 = vmax.f32 %v912_v42, 0.0  ;;  %v904_v46 = vadd.f32 %v2791_v51, %v903_v44  ;;  %1282 = vadd.xlane.f32.xlu1 %v1215_v43  ;;  %v1213_v47 = vmul.f32 %v2794_v28, %v1143_v41 }
 0x1e2   :  { %v2228_v48 = vpop.f32.mrf.mxu1 }
 0x1e3   :  { %v915_v49 = vadd.f32 %v2228_v48, %v2791_v51  ;;  %1278 = vadd.xlane.f32.xlu0 %v1213_v47  ;;  %v1146_v52 = vmax.f32 %v904_v46, 0.0  ;;  %v1218_v55 = vmul.f32 %v2794_v28, %v1148_v45 }
 0x1e4   :  { %v906_v50 = vpop.f32.mrf.mxu1 }
 0x1e5   :  { %v1149_v53 = vmax.f32 %v915_v49, 0.0  ;;  %v907_v54 = vadd.f32 %v2791_v51, %v906_v50  ;;  %v1216_v63 = vmul.f32 %v2794_v28, %v1146_v52 }
 0x1e6   :  { %v2231_v56 = vpop.f32.mrf.mxu1 }
 0x1e7   :  { %v1147_v57 = vmax.f32 %v907_v54, 0.0  ;;  %v928_v58 = vadd.f32 %v2231_v56, %v2791_v51  ;;  %1288 = vadd.xlane.f32.xlu0 %v1218_v55  ;;  %v1219_v59 = vmul.f32 %v2794_v28, %v1149_v53 }
 0x1e8   :  { %v919_v60 = vpop.f32.mrf.mxu1 }
 0x1e9   :  { %v1152_v61 = vmax.f32 %v928_v58, 0.0  ;;  %v920_v62 = vadd.f32 %v2791_v51, %v919_v60  ;;  %1290 = vadd.xlane.f32.xlu1 %v1219_v59  ;;  %v1217_v2 = vmul.f32 %v2794_v28, %v1147_v57 }
 0x1ea   :  { %v2232_v0 = vpop.f32.mrf.mxu1 }
 0x1eb   :  { %v931_v1 = vadd.f32 %v2232_v0, %v2791_v51  ;;  %1284 = vadd.xlane.f32.xlu0 %v1216_v63  ;;  %v1150_v4 = vmax.f32 %v920_v62, 0.0  ;;  %v1222_v7 = vmul.f32 %v2794_v28, %v1152_v61 }
 0x1ec   :  { %v922_v3 = vpop.f32.mrf.mxu1 }
 0x1ed   :  { %v1153_v5 = vmax.f32 %v931_v1, 0.0  ;;  %v923_v6 = vadd.f32 %v2791_v51, %v922_v3  ;;  %1286 = vadd.xlane.f32.xlu1 %v1217_v2  ;;  %v1220_v15 = vmul.f32 %v2794_v28, %v1150_v4 }
 0x1ee   :  { %v2235_v8 = vpop.f32.mrf.mxu1 }
 0x1ef   :  { %v1151_v9 = vmax.f32 %v923_v6, 0.0  ;;  %v944_v10 = vadd.f32 %v2235_v8, %v2791_v51  ;;  %1296 = vadd.xlane.f32.xlu0 %v1222_v7  ;;  %v1223_v11 = vmul.f32 %v2794_v28, %v1153_v5 }
 0x1f0   :  { %v935_v12 = vpop.f32.mrf.mxu1 }
 0x1f1   :  { %v1156_v13 = vmax.f32 %v944_v10, 0.0  ;;  %v936_v14 = vadd.f32 %v2791_v51, %v935_v12  ;;  %1298 = vadd.xlane.f32.xlu1 %v1223_v11  ;;  %v1221_v18 = vmul.f32 %v2794_v28, %v1151_v9 }
 0x1f2   :  { %v2236_v16 = vpop.f32.mrf.mxu1 }
 0x1f3   :  { %v947_v17 = vadd.f32 %v2236_v16, %v2791_v51  ;;  %1292 = vadd.xlane.f32.xlu0 %v1220_v15  ;;  %v1154_v20 = vmax.f32 %v936_v14, 0.0  ;;  %v1226_v23 = vmul.f32 %v2794_v28, %v1156_v13 }
 0x1f4   :  { %v938_v19 = vpop.f32.mrf.mxu1 }
 0x1f5   :  { %v1157_v21 = vmax.f32 %v947_v17, 0.0  ;;  %v939_v22 = vadd.f32 %v2791_v51, %v938_v19  ;;  %1294 = vadd.xlane.f32.xlu1 %v1221_v18  ;;  %v1224_v32 = vmul.f32 %v2794_v28, %v1154_v20 }
 0x1f6   :  { %v2239_v24 = vpop.f32.mrf.mxu1 }
 0x1f7   :  { %v1155_v25 = vmax.f32 %v939_v22, 0.0  ;;  %v960_v26 = vadd.f32 %v2239_v24, %v2791_v51  ;;  %1304 = vadd.xlane.f32.xlu0 %v1226_v23  ;;  %v1227_v27 = vmul.f32 %v2794_v28, %v1157_v21 }
 0x1f8   :  { %v951_v29 = vpop.f32.mrf.mxu1 }
 0x1f9   :  { %v1160_v30 = vmax.f32 %v960_v26, 0.0  ;;  %v952_v31 = vadd.f32 %v2791_v51, %v951_v29  ;;  %1306 = vadd.xlane.f32.xlu1 %v1227_v27  ;;  %v1225_v35 = vmul.f32 %v2794_v28, %v1155_v25 }
 0x1fa   :  { %v2240_v33 = vpop.f32.mrf.mxu1 }
 0x1fb   :  { %v963_v34 = vadd.f32 %v2240_v33, %v2791_v51  ;;  %1300 = vadd.xlane.f32.xlu0 %v1224_v32  ;;  %v1158_v37 = vmax.f32 %v952_v31, 0.0  ;;  %v1230_v40 = vmul.f32 %v2794_v28, %v1160_v30 }
 0x1fc   :  { %v954_v36 = vpop.f32.mrf.mxu1 }
 0x1fd   :  { %v1161_v38 = vmax.f32 %v963_v34, 0.0  ;;  %v955_v39 = vadd.f32 %v2791_v51, %v954_v36  ;;  %1302 = vadd.xlane.f32.xlu1 %v1225_v35  ;;  %v1228_v48 = vmul.f32 %v2794_v28, %v1158_v37 }
 0x1fe   :  { %v2243_v41 = vpop.f32.mrf.mxu1 }
 0x1ff   :  { %v1159_v42 = vmax.f32 %v955_v39, 0.0  ;;  %v976_v43 = vadd.f32 %v2243_v41, %v2791_v51  ;;  %1312 = vadd.xlane.f32.xlu0 %v1230_v40  ;;  %v1231_v44 = vmul.f32 %v2794_v28, %v1161_v38 }
 0x200   :  { %v967_v45 = vpop.f32.mrf.mxu1 }
 0x201   :  { %v1164_v46 = vmax.f32 %v976_v43, 0.0  ;;  %v968_v47 = vadd.f32 %v2791_v51, %v967_v45  ;;  %1314 = vadd.xlane.f32.xlu1 %v1231_v44  ;;  %v1229_v52 = vmul.f32 %v2794_v28, %v1159_v42 }
 0x202   :  { %v2244_v49 = vpop.f32.mrf.mxu1 }
 0x203   :  { %v979_v50 = vadd.f32 %v2244_v49, %v2791_v51  ;;  %1308 = vadd.xlane.f32.xlu0 %v1228_v48  ;;  %v1162_v54 = vmax.f32 %v968_v47, 0.0  ;;  %v1234_v57 = vmul.f32 %v2794_v28, %v1164_v46 }
 0x204   :  { %v970_v53 = vpop.f32.mrf.mxu1 }
 0x205   :  { %v1165_v55 = vmax.f32 %v979_v50, 0.0  ;;  %v971_v56 = vadd.f32 %v2791_v51, %v970_v53  ;;  %1310 = vadd.xlane.f32.xlu1 %v1229_v52  ;;  %v1232_v1 = vmul.f32 %v2794_v28, %v1162_v54 }
 0x206   :  { %v2247_v58 = vpop.f32.mrf.mxu1 }
 0x207   :  { %v1163_v59 = vmax.f32 %v971_v56, 0.0  ;;  %v992_v60 = vadd.f32 %v2247_v58, %v2791_v51  ;;  %1320 = vadd.xlane.f32.xlu0 %v1234_v57  ;;  %v1235_v61 = vmul.f32 %v2794_v28, %v1165_v55 }
 0x208   :  { %v983_v62 = vpop.f32.mrf.mxu1 }
 0x209   :  { %v1168_v63 = vmax.f32 %v992_v60, 0.0  ;;  %v984_v0 = vadd.f32 %v2791_v51, %v983_v62  ;;  %1322 = vadd.xlane.f32.xlu1 %v1235_v61  ;;  %v1233_v4 = vmul.f32 %v2794_v28, %v1163_v59 }
 0x20a   :  { %v2248_v2 = vpop.f32.mrf.mxu1 }
 0x20b   :  { %v995_v3 = vadd.f32 %v2248_v2, %v2791_v51  ;;  %1316 = vadd.xlane.f32.xlu0 %v1232_v1  ;;  %v1166_v6 = vmax.f32 %v984_v0, 0.0  ;;  %v1238_v9 = vmul.f32 %v2794_v28, %v1168_v63 }
 0x20c   :  { %v986_v5 = vpop.f32.mrf.mxu1 }
 0x20d   :  { %v1169_v7 = vmax.f32 %v995_v3, 0.0  ;;  %v987_v8 = vadd.f32 %v2791_v51, %v986_v5  ;;  %1318 = vadd.xlane.f32.xlu1 %v1233_v4  ;;  %v1236_v17 = vmul.f32 %v2794_v28, %v1166_v6 }
 0x20e   :  { %v2251_v10 = vpop.f32.mrf.mxu1 }
 0x20f   :  { %v1167_v11 = vmax.f32 %v987_v8, 0.0  ;;  %v1008_v12 = vadd.f32 %v2251_v10, %v2791_v51  ;;  %1328 = vadd.xlane.f32.xlu0 %v1238_v9  ;;  %v1239_v13 = vmul.f32 %v2794_v28, %v1169_v7 }
 0x210   :  { %v999_v14 = vpop.f32.mrf.mxu1 }
 0x211   :  { %v1172_v15 = vmax.f32 %v1008_v12, 0.0  ;;  %v1000_v16 = vadd.f32 %v2791_v51, %v999_v14  ;;  %1330 = vadd.xlane.f32.xlu1 %v1239_v13  ;;  %v1237_v20 = vmul.f32 %v2794_v28, %v1167_v11 }
 0x212   :  { %v2252_v18 = vpop.f32.mrf.mxu1 }
 0x213   :  { %v1011_v19 = vadd.f32 %v2252_v18, %v2791_v51  ;;  %1324 = vadd.xlane.f32.xlu0 %v1236_v17  ;;  %v1170_v22 = vmax.f32 %v1000_v16, 0.0  ;;  %v1242_v25 = vmul.f32 %v2794_v28, %v1172_v15 }
 0x214   :  { %v1002_v21 = vpop.f32.mrf.mxu1 }
 0x215   :  { %v1173_v23 = vmax.f32 %v1011_v19, 0.0  ;;  %v1003_v24 = vadd.f32 %v2791_v51, %v1002_v21  ;;  %1326 = vadd.xlane.f32.xlu1 %v1237_v20  ;;  %v1240_v34 = vmul.f32 %v2794_v28, %v1170_v22 }
 0x216   :  { %v2255_v26 = vpop.f32.mrf.mxu1 }
 0x217   :  { %v1171_v27 = vmax.f32 %v1003_v24, 0.0  ;;  %v1024_v29 = vadd.f32 %v2255_v26, %v2791_v51  ;;  %1336 = vadd.xlane.f32.xlu0 %v1242_v25  ;;  %v1243_v30 = vmul.f32 %v2794_v28, %v1173_v23 }
 0x218   :  { %v1015_v31 = vpop.f32.mrf.mxu1 }
 0x219   :  { %v1176_v32 = vmax.f32 %v1024_v29, 0.0  ;;  %v1016_v33 = vadd.f32 %v2791_v51, %v1015_v31  ;;  %1338 = vadd.xlane.f32.xlu1 %v1243_v30  ;;  %v1241_v37 = vmul.f32 %v2794_v28, %v1171_v27 }
 0x21a   :  { %v2256_v35 = vpop.f32.mrf.mxu1 }
 0x21b   :  { %v1027_v36 = vadd.f32 %v2256_v35, %v2791_v51  ;;  %1332 = vadd.xlane.f32.xlu0 %v1240_v34  ;;  %v1174_v39 = vmax.f32 %v1016_v33, 0.0  ;;  %v1246_v42 = vmul.f32 %v2794_v28, %v1176_v32 }
 0x21c   :  { %v1018_v38 = vpop.f32.mrf.mxu1 }
 0x21d   :  { %v1177_v40 = vmax.f32 %v1027_v36, 0.0  ;;  %v1019_v41 = vadd.f32 %v2791_v51, %v1018_v38  ;;  %1334 = vadd.xlane.f32.xlu1 %v1241_v37  ;;  %v1244_v50 = vmul.f32 %v2794_v28, %v1174_v39 }
 0x21e   :  { %v2259_v43 = vpop.f32.mrf.mxu1 }
 0x21f   :  { %v1175_v44 = vmax.f32 %v1019_v41, 0.0  ;;  %v1040_v45 = vadd.f32 %v2259_v43, %v2791_v51  ;;  %1344 = vadd.xlane.f32.xlu0 %v1246_v42  ;;  %v1247_v46 = vmul.f32 %v2794_v28, %v1177_v40 }
 0x220   :  { %v1031_v47 = vpop.f32.mrf.mxu1 }
 0x221   :  { %v1180_v48 = vmax.f32 %v1040_v45, 0.0  ;;  %v1032_v49 = vadd.f32 %v2791_v51, %v1031_v47  ;;  %1346 = vadd.xlane.f32.xlu1 %v1247_v46  ;;  %v1245_v54 = vmul.f32 %v2794_v28, %v1175_v44 }
 0x222   :  { %v2260_v52 = vpop.f32.mrf.mxu1 }
 0x223   :  { %v1043_v53 = vadd.f32 %v2260_v52, %v2791_v51  ;;  %1340 = vadd.xlane.f32.xlu0 %v1244_v50  ;;  %v1178_v56 = vmax.f32 %v1032_v49, 0.0  ;;  %v1250_v59 = vmul.f32 %v2794_v28, %v1180_v48 }
 0x224   :  { %v1034_v55 = vpop.f32.mrf.mxu1 }
 0x225   :  { %v1181_v57 = vmax.f32 %v1043_v53, 0.0  ;;  %v1035_v58 = vadd.f32 %v2791_v51, %v1034_v55  ;;  %1342 = vadd.xlane.f32.xlu1 %v1245_v54  ;;  %v1248_v3 = vmul.f32 %v2794_v28, %v1178_v56 }
 0x226   :  { %v2263_v60 = vpop.f32.mrf.mxu1 }
 0x227   :  { %v1179_v61 = vmax.f32 %v1035_v58, 0.0  ;;  %v1056_v62 = vadd.f32 %v2263_v60, %v2791_v51  ;;  %1352 = vadd.xlane.f32.xlu0 %v1250_v59  ;;  %v1251_v63 = vmul.f32 %v2794_v28, %v1181_v57 }
 0x228   :  { %v1047_v0 = vpop.f32.mrf.mxu1 }
 0x229   :  { %v1184_v1 = vmax.f32 %v1056_v62, 0.0  ;;  %v1048_v2 = vadd.f32 %v2791_v51, %v1047_v0  ;;  %1354 = vadd.xlane.f32.xlu1 %v1251_v63  ;;  %v1249_v6 = vmul.f32 %v2794_v28, %v1179_v61 }
 0x22a   :  { %v2264_v4 = vpop.f32.mrf.mxu1 }
 0x22b   :  { %v1059_v5 = vadd.f32 %v2264_v4, %v2791_v51  ;;  %1348 = vadd.xlane.f32.xlu0 %v1248_v3  ;;  %v1182_v8 = vmax.f32 %v1048_v2, 0.0  ;;  %v1254_v11 = vmul.f32 %v2794_v28, %v1184_v1 }
 0x22c   :  { %v1050_v7 = vpop.f32.mrf.mxu1 }
 0x22d   :  { %v1185_v9 = vmax.f32 %v1059_v5, 0.0  ;;  %v1051_v10 = vadd.f32 %v2791_v51, %v1050_v7  ;;  %1350 = vadd.xlane.f32.xlu1 %v1249_v6  ;;  %v1252_v19 = vmul.f32 %v2794_v28, %v1182_v8 }
 0x22e   :  { %v2267_v12 = vpop.f32.mrf.mxu1 }
 0x22f   :  { %v1183_v13 = vmax.f32 %v1051_v10, 0.0  ;;  %v1072_v14 = vadd.f32 %v2267_v12, %v2791_v51  ;;  %1360 = vadd.xlane.f32.xlu0 %v1254_v11  ;;  %v1255_v15 = vmul.f32 %v2794_v28, %v1185_v9 }
 0x230   :  { %v1063_v16 = vpop.f32.mrf.mxu1 }
 0x231   :  { %v1188_v17 = vmax.f32 %v1072_v14, 0.0  ;;  %v1064_v18 = vadd.f32 %v2791_v51, %v1063_v16  ;;  %1362 = vadd.xlane.f32.xlu1 %v1255_v15  ;;  %v1253_v22 = vmul.f32 %v2794_v28, %v1183_v13 }
 0x232   :  { %v2268_v20 = vpop.f32.mrf.mxu1 }
 0x233   :  { %v1075_v21 = vadd.f32 %v2268_v20, %v2791_v51  ;;  %1356 = vadd.xlane.f32.xlu0 %v1252_v19  ;;  %v1186_v24 = vmax.f32 %v1064_v18, 0.0  ;;  %v1258_v27 = vmul.f32 %v2794_v28, %v1188_v17 }
 0x234   :  { %v1066_v23 = vpop.f32.mrf.mxu1 }
 0x235   :  { %v1189_v25 = vmax.f32 %v1075_v21, 0.0  ;;  %v1067_v26 = vadd.f32 %v2791_v51, %v1066_v23  ;;  %1358 = vadd.xlane.f32.xlu1 %v1253_v22  ;;  %v1256_v36 = vmul.f32 %v2794_v28, %v1186_v24 }
 0x236   :  { %v2271_v29 = vpop.f32.mrf.mxu1 }
 0x237   :  { %v1187_v30 = vmax.f32 %v1067_v26, 0.0  ;;  %v1088_v31 = vadd.f32 %v2271_v29, %v2791_v51  ;;  %1368 = vadd.xlane.f32.xlu0 %v1258_v27  ;;  %v1259_v32 = vmul.f32 %v2794_v28, %v1189_v25 }
 0x238   :  { %v1079_v33 = vpop.f32.mrf.mxu1 }
 0x239   :  { %v1192_v34 = vmax.f32 %v1088_v31, 0.0  ;;  %v1080_v35 = vadd.f32 %v2791_v51, %v1079_v33  ;;  %1370 = vadd.xlane.f32.xlu1 %v1259_v32  ;;  %v1257_v39 = vmul.f32 %v2794_v28, %v1187_v30 }
 0x23a   :  { %v2272_v37 = vpop.f32.mrf.mxu1 }
 0x23b   :  { %v1091_v38 = vadd.f32 %v2272_v37, %v2791_v51  ;;  %1364 = vadd.xlane.f32.xlu0 %v1256_v36  ;;  %v1190_v41 = vmax.f32 %v1080_v35, 0.0  ;;  %v1262_v44 = vmul.f32 %v2794_v28, %v1192_v34  ;;  %v2923_v35 = vld [vmem:[#allocation2] ss:$0 sm:$0xff] }
 0x23c   :  { %v1082_v40 = vpop.f32.mrf.mxu1 }
 0x23d   :  { %v1193_v42 = vmax.f32 %v1091_v38, 0.0  ;;  %v1083_v43 = vadd.f32 %v2791_v51, %v1082_v40  ;;  %1366 = vadd.xlane.f32.xlu1 %v1257_v39  ;;  %v1260_v53 = vmul.f32 %v2794_v28, %v1190_v41 }
 0x23e   :  { %v2275_v45 = vpop.f32.mrf.mxu1 }
 0x23f   :  { %v1191_v46 = vmax.f32 %v1083_v43, 0.0  ;;  %v1104_v47 = vadd.f32 %v2275_v45, %v2791_v51  ;;  %1376 = vadd.xlane.f32.xlu0 %v1262_v44  ;;  %v1263_v48 = vmul.f32 %v2794_v28, %v1193_v42 }
 0x240   :  { %v1095_v49 = vpop.f32.mrf.mxu1 }
 0x241   :  { %v1196_v50 = vmax.f32 %v1104_v47, 0.0  ;;  %v1096_v52 = vadd.f32 %v2791_v51, %v1095_v49  ;;  %1378 = vadd.xlane.f32.xlu1 %v1263_v48  ;;  %v1261_v56 = vmul.f32 %v2794_v28, %v1191_v46 }
 0x242   :  { %v2276_v54 = vpop.f32.mrf.mxu1 }
 0x243   :  { %v1107_v55 = vadd.f32 %v2276_v54, %v2791_v51  ;;  %1372 = vadd.xlane.f32.xlu0 %v1260_v53  ;;  %v1194_v58 = vmax.f32 %v1096_v52, 0.0  ;;  %v1266_v61 = vmul.f32 %v2794_v28, %v1196_v50 }
 0x244   :  { %v1098_v57 = vpop.f32.mrf.mxu1 }
 0x245   :  { %v1197_v59 = vmax.f32 %v1107_v55, 0.0  ;;  %v1099_v60 = vadd.f32 %v2791_v51, %v1098_v57  ;;  %1374 = vadd.xlane.f32.xlu1 %v1261_v56  ;;  %v1264_v5 = vmul.f32 %v2794_v28, %v1194_v58 }
 0x246   :  { %v2279_v62 = vpop.f32.mrf.mxu1 }
 0x247   :  { %v1195_v63 = vmax.f32 %v1099_v60, 0.0  ;;  %v1120_v0 = vadd.f32 %v2279_v62, %v2791_v51  ;;  %1384 = vadd.xlane.f32.xlu0 %v1266_v61  ;;  %v1267_v1 = vmul.f32 %v2794_v28, %v1197_v59 }
 0x248   :  { %v1111_v2 = vpop.f32.mrf.mxu1 }
 0x249   :  { %v1200_v3 = vmax.f32 %v1120_v0, 0.0  ;;  %v1112_v4 = vadd.f32 %v2791_v51, %v1111_v2  ;;  %1386 = vadd.xlane.f32.xlu1 %v1267_v1  ;;  %v1265_v8 = vmul.f32 %v2794_v28, %v1195_v63 }
 0x24a   :  { %v2280_v6 = vpop.f32.mrf.mxu1 }
 0x24b   :  { %v1123_v7 = vadd.f32 %v2280_v6, %v2791_v51  ;;  %1380 = vadd.xlane.f32.xlu0 %v1264_v5  ;;  %v1198_v10 = vmax.f32 %v1112_v4, 0.0  ;;  %v1270_v13 = vmul.f32 %v2794_v28, %v1200_v3 }
 0x24c   :  { %v1114_v9 = vpop.f32.mrf.mxu1 }
 0x24d   :  { %v1201_v11 = vmax.f32 %v1123_v7, 0.0  ;;  %v1115_v12 = vadd.f32 %v2791_v51, %v1114_v9  ;;  %1382 = vadd.xlane.f32.xlu1 %v1265_v8  ;;  %v1268_v20 = vmul.f32 %v2794_v28, %v1198_v10 }
 0x24e   :  { %v2283_v14 = vpop.f32.mrf.mxu1 }
 0x24f   :  { %v1199_v15 = vmax.f32 %v1115_v12, 0.0  ;;  %1392 = vadd.xlane.f32.xlu0 %v1270_v13  ;;  %v1271_v16 = vmul.f32 %v2794_v28, %v1201_v11  ;;  %v1136_v18 = vadd.f32 %v2283_v14, %v2791_v51 }
 0x250   :  { %v1127_v17 = vpop.f32.mrf.mxu1 }
 0x251   :  { %v1128_v19 = vadd.f32 %v2791_v51, %v1127_v17  ;;  %1394 = vadd.xlane.f32.xlu1 %v1271_v16  ;;  %v1269_v23 = vmul.f32 %v2794_v28, %v1199_v15  ;;  %v1204_v25 = vmax.f32 %v1136_v18, 0.0 }
 0x252   :  { %v2284_v21 = vpop.f32.mrf.mxu1 }
 0x253   :  { %v1202_v22 = vmax.f32 %v1128_v19, 0.0  ;;  %1388 = vadd.xlane.f32.xlu0 %v1268_v20  ;;  %v1139_v26 = vadd.f32 %v2284_v21, %v2791_v51  ;;  %v1274_v33 = vmul.f32 %v2794_v28, %v1204_v25 }
 0x254   :  { %v1130_v24 = vpop.f32.mrf.mxu1 }
 0x255   :  { %v1131_v27 = vadd.f32 %v2791_v51, %v1130_v24  ;;  %1390 = vadd.xlane.f32.xlu1 %v1269_v23  ;;  %v1272_v29 = vmul.f32 %v2794_v28, %v1202_v22  ;;  %v1205_v31 = vmax.f32 %v1139_v26, 0.0 }
 0x257   :  { %v1203_v30 = vmax.f32 %v1131_v27, 0.0  ;;  %1396 = vadd.xlane.f32.xlu0 %v1272_v29  ;;  %v1275_v34 = vmul.f32 %v2794_v28, %v1205_v31 }
 0x259   :  { %v1273_v32 = vmul.f32 %v2794_v28, %v1203_v30 }
 0x25b   :  { %1398 = vadd.xlane.f32.xlu1 %v1273_v32  ;;  %1400 = vadd.xlane.f32.xlu0 %v1274_v33 }
 0x25f   :  { %1402 = vadd.xlane.f32.xlu1 %v1275_v34 }
 0x266   :  { %v1281_v36 = vpop.xlane.xlu1 %1280 }
 0x267   :  { %v1413_v51 = vadd.f32 %v2923_v35, %v1281_v36 }
 0x268   :  { %v1277_v37 = vpop.xlane.xlu0 %1276 }
 0x269   :  { %v1983_v38 = vmul.f32 -1.442695, %v1413_v51  ;;  %v1411_v39 = vadd.f32 %v2923_v35, %v1277_v37 }
 0x26a   :  { %v1283_v40 = vpop.xlane.xlu1 %1282 }
 0x26b   :  { %2338 = vpow2.f32 %v1983_v38  ;;  %v1981_v41 = vmul.f32 -1.442695, %v1411_v39  ;;  %v1414_v42 = vadd.f32 %v2923_v35, %v1283_v40 }
 0x26c   :  { %v1279_v43 = vpop.xlane.xlu0 %1278 }
 0x26d   :  { %2340 = vpow2.f32 %v1981_v41  ;;  %v1984_v44 = vmul.f32 -1.442695, %v1414_v42  ;;  %v1412_v28 = vadd.f32 %v2923_v35, %v1279_v43 }
 0x26f   :  { %2342 = vpow2.f32 %v1984_v44  ;;  %v1982_v45 = vmul.f32 -1.442695, %v1412_v28 }
 0x270   :  { %v1289_v46 = vpop.xlane.xlu0 %1288 }
 0x271   :  { %2344 = vpow2.f32 %v1982_v45  ;;  %v1417_v47 = vadd.f32 %v2923_v35, %v1289_v46 }
 0x272   :  { %v1291_v48 = vpop.xlane.xlu1 %1290 }
 0x273   :  { %v1987_v49 = vmul.f32 -1.442695, %v1417_v47  ;;  %v1418_v50 = vadd.f32 %v2923_v35, %v1291_v48 }
 0x274   :  { %v1285_v52 = vpop.xlane.xlu0 %1284 }
 0x275   :  { %2346 = vpow2.f32 %v1987_v49  ;;  %v1988_v53 = vmul.f32 -1.442695, %v1418_v50  ;;  %v1415_v54 = vadd.f32 %v2923_v35, %v1285_v52 }
 0x276   :  { %v1287_v55 = vpop.xlane.xlu1 %1286 }
 0x277   :  { %2348 = vpow2.f32 %v1988_v53  ;;  %v1985_v56 = vmul.f32 -1.442695, %v1415_v54  ;;  %v1416_v57 = vadd.f32 %v2923_v35, %v1287_v55 }
 0x278   :  { %v2339_v58 = vpop.eup %2338  ;;  %v1297_v59 = vpop.xlane.xlu0 %1296 }
 0x279   :  { %v1669_v60 = vadd.f32 1.0, %v2339_v58  ;;  %2350 = vpow2.f32 %v1985_v56  ;;  %v1986_v61 = vmul.f32 -1.442695, %v1416_v57  ;;  %v1421_v62 = vadd.f32 %v2923_v35, %v1297_v59 }
 0x27a   :  { %v2341_v63 = vpop.eup %2340  ;;  %v1299_v0 = vpop.xlane.xlu1 %1298 }
 0x27b   :  { %2352 = vrcp.f32 %v1669_v60  ;;  %v1667_v1 = vadd.f32 1.0, %v2341_v63  ;;  %v1991_v2 = vmul.f32 -1.442695, %v1421_v62  ;;  %v1422_v3 = vadd.f32 %v2923_v35, %v1299_v0 }
 0x27c   :  { %v2343_v4 = vpop.eup %2342  ;;  %2354 = vpow2.f32 %v1986_v61  ;;  %v1293_v5 = vpop.xlane.xlu0 %1292 }
 0x27d   :  { %2356 = vrcp.f32 %v1667_v1  ;;  %v1670_v6 = vadd.f32 1.0, %v2343_v4  ;;  %v1992_v7 = vmul.f32 -1.442695, %v1422_v3  ;;  %v1419_v8 = vadd.f32 %v2923_v35, %v1293_v5 }
 0x27e   :  { %v2345_v9 = vpop.eup %2344  ;;  %2358 = vpow2.f32 %v1991_v2  ;;  %v1295_v10 = vpop.xlane.xlu1 %1294 }
 0x27f   :  { %2360 = vrcp.f32 %v1670_v6  ;;  %v1668_v11 = vadd.f32 1.0, %v2345_v9  ;;  %v1989_v12 = vmul.f32 -1.442695, %v1419_v8  ;;  %v1420_v13 = vadd.f32 %v2923_v35, %v1295_v10 }
 0x280   :  { %2362 = vpow2.f32 %v1992_v7  ;;  %v1305_v14 = vpop.xlane.xlu0 %1304 }
 0x281   :  { %2364 = vrcp.f32 %v1668_v11  ;;  %v1990_v15 = vmul.f32 -1.442695, %v1420_v13  ;;  %v1425_v16 = vadd.f32 %v2923_v35, %v1305_v14 }
 0x282   :  { %v2347_v17 = vpop.eup %2346  ;;  %2366 = vpow2.f32 %v1989_v12  ;;  %v1307_v18 = vpop.xlane.xlu1 %1306 }
 0x283   :  { %v1673_v19 = vadd.f32 1.0, %v2347_v17  ;;  %2368 = vpow2.f32 %v1990_v15  ;;  %v1995_v20 = vmul.f32 -1.442695, %v1425_v16  ;;  %v1426_v21 = vadd.f32 %v2923_v35, %v1307_v18 }
 0x284   :  { %v2349_v22 = vpop.eup %2348  ;;  %v1301_v23 = vpop.xlane.xlu0 %1300 }
 0x285   :  { %2370 = vrcp.f32 %v1673_v19  ;;  %v1674_v24 = vadd.f32 1.0, %v2349_v22  ;;  %v1996_v25 = vmul.f32 -1.442695, %v1426_v21  ;;  %v1423_v26 = vadd.f32 %v2923_v35, %v1301_v23 }
 0x286   :  { %v2351_v27 = vpop.eup %2350  ;;  %2372 = vpow2.f32 %v1995_v20  ;;  %v1303_v29 = vpop.xlane.xlu1 %1302 }
 0x287   :  { %2374 = vrcp.f32 %v1674_v24  ;;  %v1671_v30 = vadd.f32 1.0, %v2351_v27  ;;  %v1993_v31 = vmul.f32 -1.442695, %v1423_v26  ;;  %v1424_v32 = vadd.f32 %v2923_v35, %v1303_v29 }
 0x288   :  { %v2353_v33 = vpop.eup %2352  ;;  %2376 = vpow2.f32 %v1996_v25  ;;  %v1313_v34 = vpop.xlane.xlu0 %1312 }
 0x289   :  { %v2355_v36 = vpop.eup %2354  ;;  %1862 = vst.msk [vmem:[%s3251_s7 + $0x10] sm:$0xff] %vm1859_vm0, %v2353_v33  ;;  %2378 = vrcp.f32 %v1671_v30  ;;  %v1994_v51 = vmul.f32 -1.442695, %v1424_v32  ;;  %v1429_v37 = vadd.f32 %v2923_v35, %v1313_v34 }
 0x28a   :  { %v2357_v38 = vpop.eup %2356  ;;  %v1672_v39 = vadd.f32 1.0, %v2355_v36  ;;  %2380 = vpow2.f32 %v1993_v31  ;;  %v1315_v40 = vpop.xlane.xlu1 %1314 }
 0x28b   :  { %v2359_v41 = vpop.eup %2358  ;;  %1860 = vst.msk [vmem:[%s3251_s7] sm:$0xff] %vm1859_vm0, %v2357_v38  ;;  %2382 = vpow2.f32 %v1994_v51  ;;  %v1999_v42 = vmul.f32 -1.442695, %v1429_v37  ;;  %v1430_v43 = vadd.f32 %v2923_v35, %v1315_v40 }
 0x28c   :  { %v2361_v44 = vpop.eup %2360  ;;  %2384 = vrcp.f32 %v1672_v39  ;;  %v1677_v28 = vadd.f32 1.0, %v2359_v41  ;;  %v1309_v45 = vpop.xlane.xlu0 %1308 }
 0x28d   :  { %v2363_v46 = vpop.eup %2362  ;;  %1863 = vst.msk [vmem:[%s3251_s7 + $0x18] sm:$0xff] %vm1859_vm0, %v2361_v44  ;;  %2386 = vpow2.f32 %v1999_v42  ;;  %v2000_v47 = vmul.f32 -1.442695, %v1430_v43  ;;  %v1427_v48 = vadd.f32 %v2923_v35, %v1309_v45 }
 0x28e   :  { %v2365_v49 = vpop.eup %2364  ;;  %2388 = vrcp.f32 %v1677_v28  ;;  %v1678_v50 = vadd.f32 1.0, %v2363_v46  ;;  %v1311_v52 = vpop.xlane.xlu1 %1310 }
 0x28f   :  { %v2367_v53 = vpop.eup %2366  ;;  %1861 = vst.msk [vmem:[%s3251_s7 + $0x8] sm:$0xff] %vm1859_vm0, %v2365_v49  ;;  %2390 = vpow2.f32 %v2000_v47  ;;  %v1997_v54 = vmul.f32 -1.442695, %v1427_v48  ;;  %v1428_v55 = vadd.f32 %v2923_v35, %v1311_v52 }
 0x290   :  { %v2369_v56 = vpop.eup %2368  ;;  %2392 = vrcp.f32 %v1678_v50  ;;  %v1675_v57 = vadd.f32 1.0, %v2367_v53  ;;  %v1321_v58 = vpop.xlane.xlu0 %1320 }
 0x291   :  { %v1676_v59 = vadd.f32 1.0, %v2369_v56  ;;  %2394 = vpow2.f32 %v1997_v54  ;;  %v1998_v60 = vmul.f32 -1.442695, %v1428_v55  ;;  %v1433_v61 = vadd.f32 %v2923_v35, %v1321_v58 }
 0x292   :  { %v2371_v62 = vpop.eup %2370  ;;  %2396 = vrcp.f32 %v1675_v57  ;;  %v1323_v63 = vpop.xlane.xlu1 %1322 }
 0x293   :  { %v2373_v0 = vpop.eup %2372  ;;  %1866 = vst.msk [vmem:[%s3251_s7 + $0x30] sm:$0xff] %vm1859_vm0, %v2371_v62  ;;  %2398 = vrcp.f32 %v1676_v59  ;;  %v2003_v1 = vmul.f32 -1.442695, %v1433_v61  ;;  %v1434_v2 = vadd.f32 %v2923_v35, %v1323_v63 }
 0x294   :  { %v2375_v3 = vpop.eup %2374  ;;  %v1681_v4 = vadd.f32 1.0, %v2373_v0  ;;  %2400 = vpow2.f32 %v1998_v60  ;;  %v1317_v5 = vpop.xlane.xlu0 %1316 }
 0x295   :  { %v2377_v6 = vpop.eup %2376  ;;  %1867 = vst.msk [vmem:[%s3251_s7 + $0x38] sm:$0xff] %vm1859_vm0, %v2375_v3  ;;  %2402 = vpow2.f32 %v2003_v1  ;;  %v2004_v7 = vmul.f32 -1.442695, %v1434_v2  ;;  %v1431_v8 = vadd.f32 %v2923_v35, %v1317_v5 }
 0x296   :  { %v2379_v9 = vpop.eup %2378  ;;  %2404 = vrcp.f32 %v1681_v4  ;;  %v1682_v10 = vadd.f32 1.0, %v2377_v6  ;;  %v1319_v11 = vpop.xlane.xlu1 %1318 }
 0x297   :  { %v2381_v12 = vpop.eup %2380  ;;  %1864 = vst.msk [vmem:[%s3251_s7 + $0x20] sm:$0xff] %vm1859_vm0, %v2379_v9  ;;  %2406 = vpow2.f32 %v2004_v7  ;;  %v2001_v13 = vmul.f32 -1.442695, %v1431_v8  ;;  %v1432_v14 = vadd.f32 %v2923_v35, %v1319_v11 }
 0x298   :  { %v2383_v15 = vpop.eup %2382  ;;  %2408 = vrcp.f32 %v1682_v10  ;;  %v1679_v16 = vadd.f32 1.0, %v2381_v12  ;;  %v1329_v17 = vpop.xlane.xlu0 %1328 }
 0x299   :  { %v2385_v18 = vpop.eup %2384  ;;  %v1680_v19 = vadd.f32 1.0, %v2383_v15  ;;  %2410 = vpow2.f32 %v2001_v13  ;;  %v2002_v20 = vmul.f32 -1.442695, %v1432_v14  ;;  %v1437_v21 = vadd.f32 %v2923_v35, %v1329_v17 }
 0x29a   :  { %v2387_v22 = vpop.eup %2386  ;;  %1865 = vst.msk [vmem:[%s3251_s7 + $0x28] sm:$0xff] %vm1859_vm0, %v2385_v18  ;;  %2412 = vrcp.f32 %v1679_v16  ;;  %v1331_v23 = vpop.xlane.xlu1 %1330 }
 0x29b   :  { %v2389_v24 = vpop.eup %2388  ;;  %2414 = vrcp.f32 %v1680_v19  ;;  %v1685_v25 = vadd.f32 1.0, %v2387_v22  ;;  %v2007_v26 = vmul.f32 -1.442695, %v1437_v21  ;;  %v1438_v27 = vadd.f32 %v2923_v35, %v1331_v23 }
 0x29c   :  { %v2391_v29 = vpop.eup %2390  ;;  %1870 = vst.msk [vmem:[%s3251_s7 + $0x50] sm:$0xff] %vm1859_vm0, %v2389_v24  ;;  %2416 = vpow2.f32 %v2002_v20  ;;  %v1325_v30 = vpop.xlane.xlu0 %1324 }
 0x29d   :  { %v2393_v31 = vpop.eup %2392  ;;  %2418 = vrcp.f32 %v1685_v25  ;;  %v1686_v32 = vadd.f32 1.0, %v2391_v29  ;;  %v2008_v33 = vmul.f32 -1.442695, %v1438_v27  ;;  %v1435_v34 = vadd.f32 %v2923_v35, %v1325_v30 }
 0x29e   :  { %v2395_v36 = vpop.eup %2394  ;;  %1871 = vst.msk [vmem:[%s3251_s7 + $0x58] sm:$0xff] %vm1859_vm0, %v2393_v31  ;;  %2420 = vpow2.f32 %v2007_v26  ;;  %v1327_v51 = vpop.xlane.xlu1 %1326 }
 0x29f   :  { %v2397_v37 = vpop.eup %2396  ;;  %2422 = vrcp.f32 %v1686_v32  ;;  %v1683_v38 = vadd.f32 1.0, %v2395_v36  ;;  %v2005_v39 = vmul.f32 -1.442695, %v1435_v34  ;;  %v1436_v40 = vadd.f32 %v2923_v35, %v1327_v51 }
 0x2a0   :  { %v2399_v41 = vpop.eup %2398  ;;  %1868 = vst.msk [vmem:[%s3251_s7 + $0x40] sm:$0xff] %vm1859_vm0, %v2397_v37  ;;  %2424 = vpow2.f32 %v2008_v33  ;;  %v1337_v42 = vpop.xlane.xlu0 %1336 }
 0x2a1   :  { %v2401_v43 = vpop.eup %2400  ;;  %1869 = vst.msk [vmem:[%s3251_s7 + $0x48] sm:$0xff] %vm1859_vm0, %v2399_v41  ;;  %2426 = vrcp.f32 %v1683_v38  ;;  %v2006_v44 = vmul.f32 -1.442695, %v1436_v40  ;;  %v1441_v28 = vadd.f32 %v2923_v35, %v1337_v42 }
 0x2a2   :  { %v2403_v45 = vpop.eup %2402  ;;  %v1684_v46 = vadd.f32 1.0, %v2401_v43  ;;  %2428 = vpow2.f32 %v2005_v39  ;;  %v1339_v47 = vpop.xlane.xlu1 %1338 }
 0x2a3   :  { %v2405_v48 = vpop.eup %2404  ;;  %v1689_v49 = vadd.f32 1.0, %v2403_v45  ;;  %2430 = vpow2.f32 %v2006_v44  ;;  %v2011_v50 = vmul.f32 -1.442695, %v1441_v28  ;;  %v1442_v52 = vadd.f32 %v2923_v35, %v1339_v47 }
 0x2a4   :  { %v2407_v53 = vpop.eup %2406  ;;  %1874 = vst.msk [vmem:[%s3251_s7 + $0x70] sm:$0xff] %vm1859_vm0, %v2405_v48  ;;  %2432 = vrcp.f32 %v1684_v46  ;;  %v1333_v54 = vpop.xlane.xlu0 %1332 }
 0x2a5   :  { %v2409_v55 = vpop.eup %2408  ;;  %2434 = vrcp.f32 %v1689_v49  ;;  %v1690_v56 = vadd.f32 1.0, %v2407_v53  ;;  %v2012_v57 = vmul.f32 -1.442695, %v1442_v52  ;;  %v1439_v58 = vadd.f32 %v2923_v35, %v1333_v54 }
 0x2a6   :  { %v2411_v59 = vpop.eup %2410  ;;  %1875 = vst.msk [vmem:[%s3251_s7 + $0x78] sm:$0xff] %vm1859_vm0, %v2409_v55  ;;  %2436 = vpow2.f32 %v2011_v50  ;;  %v1335_v60 = vpop.xlane.xlu1 %1334 }
 0x2a7   :  { %v2413_v61 = vpop.eup %2412  ;;  %2438 = vrcp.f32 %v1690_v56  ;;  %v1687_v62 = vadd.f32 1.0, %v2411_v59  ;;  %v2009_v63 = vmul.f32 -1.442695, %v1439_v58  ;;  %v1440_v0 = vadd.f32 %v2923_v35, %v1335_v60 }
 0x2a8   :  { %v2415_v1 = vpop.eup %2414  ;;  %1872 = vst.msk [vmem:[%s3251_s7 + $0x60] sm:$0xff] %vm1859_vm0, %v2413_v61  ;;  %2440 = vpow2.f32 %v2012_v57  ;;  %v1345_v2 = vpop.xlane.xlu0 %1344 }
 0x2a9   :  { %v2417_v3 = vpop.eup %2416  ;;  %1873 = vst.msk [vmem:[%s3251_s7 + $0x68] sm:$0xff] %vm1859_vm0, %v2415_v1  ;;  %2442 = vrcp.f32 %v1687_v62  ;;  %v2010_v4 = vmul.f32 -1.442695, %v1440_v0  ;;  %v1445_v5 = vadd.f32 %v2923_v35, %v1345_v2 }
 0x2aa   :  { %v2419_v6 = vpop.eup %2418  ;;  %v1688_v7 = vadd.f32 1.0, %v2417_v3  ;;  %2444 = vpow2.f32 %v2009_v63  ;;  %v1347_v8 = vpop.xlane.xlu1 %1346 }
 0x2ab   :  { %v2421_v9 = vpop.eup %2420  ;;  %1878 = vst.msk [vmem:[%s3251_s7 + $0x90] sm:$0xff] %vm1859_vm0, %v2419_v6  ;;  %2446 = vpow2.f32 %v2010_v4  ;;  %v2015_v10 = vmul.f32 -1.442695, %v1445_v5  ;;  %v1446_v11 = vadd.f32 %v2923_v35, %v1347_v8 }
 0x2ac   :  { %v2423_v12 = vpop.eup %2422  ;;  %2448 = vrcp.f32 %v1688_v7  ;;  %v1693_v13 = vadd.f32 1.0, %v2421_v9  ;;  %v1341_v14 = vpop.xlane.xlu0 %1340 }
 0x2ad   :  { %v2425_v15 = vpop.eup %2424  ;;  %1879 = vst.msk [vmem:[%s3251_s7 + $0x98] sm:$0xff] %vm1859_vm0, %v2423_v12  ;;  %2450 = vpow2.f32 %v2015_v10  ;;  %v2016_v16 = vmul.f32 -1.442695, %v1446_v11  ;;  %v1443_v17 = vadd.f32 %v2923_v35, %v1341_v14 }
 0x2ae   :  { %v2427_v18 = vpop.eup %2426  ;;  %2452 = vrcp.f32 %v1693_v13  ;;  %v1694_v19 = vadd.f32 1.0, %v2425_v15  ;;  %v1343_v20 = vpop.xlane.xlu1 %1342 }
 0x2af   :  { %v2429_v21 = vpop.eup %2428  ;;  %1876 = vst.msk [vmem:[%s3251_s7 + $0x80] sm:$0xff] %vm1859_vm0, %v2427_v18  ;;  %2454 = vpow2.f32 %v2016_v16  ;;  %v2013_v22 = vmul.f32 -1.442695, %v1443_v17  ;;  %v1444_v23 = vadd.f32 %v2923_v35, %v1343_v20 }
 0x2b0   :  { %v2431_v24 = vpop.eup %2430  ;;  %2456 = vrcp.f32 %v1694_v19  ;;  %v1691_v25 = vadd.f32 1.0, %v2429_v21  ;;  %v1353_v26 = vpop.xlane.xlu0 %1352 }
 0x2b1   :  { %v2433_v27 = vpop.eup %2432  ;;  %v1692_v29 = vadd.f32 1.0, %v2431_v24  ;;  %2458 = vpow2.f32 %v2013_v22  ;;  %v2014_v30 = vmul.f32 -1.442695, %v1444_v23  ;;  %v1449_v31 = vadd.f32 %v2923_v35, %v1353_v26 }
 0x2b2   :  { %v2435_v32 = vpop.eup %2434  ;;  %1877 = vst.msk [vmem:[%s3251_s7 + $0x88] sm:$0xff] %vm1859_vm0, %v2433_v27  ;;  %2460 = vrcp.f32 %v1691_v25  ;;  %v1355_v33 = vpop.xlane.xlu1 %1354 }
 0x2b3   :  { %v2437_v34 = vpop.eup %2436  ;;  %1882 = vst.msk [vmem:[%s3251_s7 + $0xb0] sm:$0xff] %vm1859_vm0, %v2435_v32  ;;  %2462 = vrcp.f32 %v1692_v29  ;;  %v2019_v36 = vmul.f32 -1.442695, %v1449_v31  ;;  %v1450_v51 = vadd.f32 %v2923_v35, %v1355_v33 }
 0x2b4   :  { %v2439_v37 = vpop.eup %2438  ;;  %v1697_v38 = vadd.f32 1.0, %v2437_v34  ;;  %2464 = vpow2.f32 %v2014_v30  ;;  %v1349_v39 = vpop.xlane.xlu0 %1348 }
 0x2b5   :  { %v2441_v40 = vpop.eup %2440  ;;  %1883 = vst.msk [vmem:[%s3251_s7 + $0xb8] sm:$0xff] %vm1859_vm0, %v2439_v37  ;;  %2466 = vpow2.f32 %v2019_v36  ;;  %v2020_v41 = vmul.f32 -1.442695, %v1450_v51  ;;  %v1447_v42 = vadd.f32 %v2923_v35, %v1349_v39 }
 0x2b6   :  { %v2443_v43 = vpop.eup %2442  ;;  %2468 = vrcp.f32 %v1697_v38  ;;  %v1698_v44 = vadd.f32 1.0, %v2441_v40  ;;  %v1351_v28 = vpop.xlane.xlu1 %1350 }
 0x2b7   :  { %v2445_v45 = vpop.eup %2444  ;;  %1880 = vst.msk [vmem:[%s3251_s7 + $0xa0] sm:$0xff] %vm1859_vm0, %v2443_v43  ;;  %2470 = vpow2.f32 %v2020_v41  ;;  %v2017_v46 = vmul.f32 -1.442695, %v1447_v42  ;;  %v1448_v47 = vadd.f32 %v2923_v35, %v1351_v28 }
 0x2b8   :  { %v2447_v48 = vpop.eup %2446  ;;  %2472 = vrcp.f32 %v1698_v44  ;;  %v1695_v49 = vadd.f32 1.0, %v2445_v45  ;;  %v1361_v50 = vpop.xlane.xlu0 %1360 }
 0x2b9   :  { %v2449_v52 = vpop.eup %2448  ;;  %v1696_v53 = vadd.f32 1.0, %v2447_v48  ;;  %2474 = vpow2.f32 %v2017_v46  ;;  %v2018_v54 = vmul.f32 -1.442695, %v1448_v47  ;;  %v1453_v55 = vadd.f32 %v2923_v35, %v1361_v50 }
 0x2ba   :  { %v2451_v56 = vpop.eup %2450  ;;  %1881 = vst.msk [vmem:[%s3251_s7 + $0xa8] sm:$0xff] %vm1859_vm0, %v2449_v52  ;;  %2476 = vrcp.f32 %v1695_v49  ;;  %v1363_v57 = vpop.xlane.xlu1 %1362 }
 0x2bb   :  { %v2453_v58 = vpop.eup %2452  ;;  %2478 = vrcp.f32 %v1696_v53  ;;  %v1701_v59 = vadd.f32 1.0, %v2451_v56  ;;  %v2023_v60 = vmul.f32 -1.442695, %v1453_v55  ;;  %v1454_v61 = vadd.f32 %v2923_v35, %v1363_v57 }
 0x2bc   :  { %v2455_v62 = vpop.eup %2454  ;;  %1886 = vst.msk [vmem:[%s3251_s7 + $0xd0] sm:$0xff] %vm1859_vm0, %v2453_v58  ;;  %2480 = vpow2.f32 %v2018_v54  ;;  %v1357_v63 = vpop.xlane.xlu0 %1356 }
 0x2bd   :  { %v2457_v0 = vpop.eup %2456  ;;  %2482 = vrcp.f32 %v1701_v59  ;;  %v1702_v1 = vadd.f32 1.0, %v2455_v62  ;;  %v2024_v2 = vmul.f32 -1.442695, %v1454_v61  ;;  %v1451_v3 = vadd.f32 %v2923_v35, %v1357_v63 }
 0x2be   :  { %v2459_v4 = vpop.eup %2458  ;;  %1887 = vst.msk [vmem:[%s3251_s7 + $0xd8] sm:$0xff] %vm1859_vm0, %v2457_v0  ;;  %2484 = vpow2.f32 %v2023_v60  ;;  %v1359_v5 = vpop.xlane.xlu1 %1358 }
 0x2bf   :  { %v2461_v6 = vpop.eup %2460  ;;  %2486 = vrcp.f32 %v1702_v1  ;;  %v1699_v7 = vadd.f32 1.0, %v2459_v4  ;;  %v2021_v8 = vmul.f32 -1.442695, %v1451_v3  ;;  %v1452_v9 = vadd.f32 %v2923_v35, %v1359_v5 }
 0x2c0   :  { %v2463_v10 = vpop.eup %2462  ;;  %1884 = vst.msk [vmem:[%s3251_s7 + $0xc0] sm:$0xff] %vm1859_vm0, %v2461_v6  ;;  %2488 = vpow2.f32 %v2024_v2  ;;  %v1369_v11 = vpop.xlane.xlu0 %1368 }
 0x2c1   :  { %v2465_v12 = vpop.eup %2464  ;;  %1885 = vst.msk [vmem:[%s3251_s7 + $0xc8] sm:$0xff] %vm1859_vm0, %v2463_v10  ;;  %2490 = vrcp.f32 %v1699_v7  ;;  %v2022_v13 = vmul.f32 -1.442695, %v1452_v9  ;;  %v1457_v14 = vadd.f32 %v2923_v35, %v1369_v11 }
 0x2c2   :  { %v2467_v15 = vpop.eup %2466  ;;  %v1700_v16 = vadd.f32 1.0, %v2465_v12  ;;  %2492 = vpow2.f32 %v2021_v8  ;;  %v1371_v17 = vpop.xlane.xlu1 %1370 }
 0x2c3   :  { %v2469_v18 = vpop.eup %2468  ;;  %v1705_v19 = vadd.f32 1.0, %v2467_v15  ;;  %2494 = vpow2.f32 %v2022_v13  ;;  %v2027_v20 = vmul.f32 -1.442695, %v1457_v14  ;;  %v1458_v21 = vadd.f32 %v2923_v35, %v1371_v17 }
 0x2c4   :  { %v2471_v22 = vpop.eup %2470  ;;  %1890 = vst.msk [vmem:[%s3251_s7 + $0xf0] sm:$0xff] %vm1859_vm0, %v2469_v18  ;;  %2496 = vrcp.f32 %v1700_v16  ;;  %v1365_v23 = vpop.xlane.xlu0 %1364 }
 0x2c5   :  { %v2473_v24 = vpop.eup %2472  ;;  %2498 = vrcp.f32 %v1705_v19  ;;  %v1706_v25 = vadd.f32 1.0, %v2471_v22  ;;  %v2028_v26 = vmul.f32 -1.442695, %v1458_v21  ;;  %v1455_v27 = vadd.f32 %v2923_v35, %v1365_v23 }
 0x2c6   :  { %v2475_v29 = vpop.eup %2474  ;;  %1891 = vst.msk [vmem:[%s3251_s7 + $0xf8] sm:$0xff] %vm1859_vm0, %v2473_v24  ;;  %2500 = vpow2.f32 %v2027_v20  ;;  %v1367_v30 = vpop.xlane.xlu1 %1366 }
 0x2c7   :  { %v2477_v31 = vpop.eup %2476  ;;  %2502 = vrcp.f32 %v1706_v25  ;;  %v1703_v32 = vadd.f32 1.0, %v2475_v29  ;;  %v2025_v33 = vmul.f32 -1.442695, %v1455_v27  ;;  %v1456_v34 = vadd.f32 %v2923_v35, %v1367_v30 }
 0x2c8   :  { %v2479_v36 = vpop.eup %2478  ;;  %1888 = vst.msk [vmem:[%s3251_s7 + $0xe0] sm:$0xff] %vm1859_vm0, %v2477_v31  ;;  %2504 = vpow2.f32 %v2028_v26  ;;  %v1377_v51 = vpop.xlane.xlu0 %1376 }
 0x2c9   :  { %v2481_v37 = vpop.eup %2480  ;;  %1889 = vst.msk [vmem:[%s3251_s7 + $0xe8] sm:$0xff] %vm1859_vm0, %v2479_v36  ;;  %2506 = vrcp.f32 %v1703_v32  ;;  %v2026_v38 = vmul.f32 -1.442695, %v1456_v34  ;;  %v1461_v39 = vadd.f32 %v2923_v35, %v1377_v51 }
 0x2ca   :  { %v2483_v40 = vpop.eup %2482  ;;  %v1704_v41 = vadd.f32 1.0, %v2481_v37  ;;  %2508 = vpow2.f32 %v2025_v33  ;;  %v1379_v42 = vpop.xlane.xlu1 %1378 }
 0x2cb   :  { %v2485_v43 = vpop.eup %2484  ;;  %1894 = vst.msk [vmem:[%s3251_s7 + $0x110] sm:$0xff] %vm1859_vm0, %v2483_v40  ;;  %2510 = vpow2.f32 %v2026_v38  ;;  %v2031_v44 = vmul.f32 -1.442695, %v1461_v39  ;;  %v1462_v28 = vadd.f32 %v2923_v35, %v1379_v42 }
 0x2cc   :  { %v2487_v45 = vpop.eup %2486  ;;  %2512 = vrcp.f32 %v1704_v41  ;;  %v1709_v46 = vadd.f32 1.0, %v2485_v43  ;;  %v1373_v47 = vpop.xlane.xlu0 %1372 }
 0x2cd   :  { %v2489_v48 = vpop.eup %2488  ;;  %1895 = vst.msk [vmem:[%s3251_s7 + $0x118] sm:$0xff] %vm1859_vm0, %v2487_v45  ;;  %2514 = vpow2.f32 %v2031_v44  ;;  %v2032_v49 = vmul.f32 -1.442695, %v1462_v28  ;;  %v1459_v50 = vadd.f32 %v2923_v35, %v1373_v47 }
 0x2ce   :  { %v2491_v52 = vpop.eup %2490  ;;  %2516 = vrcp.f32 %v1709_v46  ;;  %v1710_v53 = vadd.f32 1.0, %v2489_v48  ;;  %v1375_v54 = vpop.xlane.xlu1 %1374 }
 0x2cf   :  { %v2493_v55 = vpop.eup %2492  ;;  %1892 = vst.msk [vmem:[%s3251_s7 + $0x100] sm:$0xff] %vm1859_vm0, %v2491_v52  ;;  %2518 = vpow2.f32 %v2032_v49  ;;  %v2029_v56 = vmul.f32 -1.442695, %v1459_v50  ;;  %v1460_v57 = vadd.f32 %v2923_v35, %v1375_v54 }
 0x2d0   :  { %v2495_v58 = vpop.eup %2494  ;;  %2520 = vrcp.f32 %v1710_v53  ;;  %v1707_v59 = vadd.f32 1.0, %v2493_v55  ;;  %v1385_v60 = vpop.xlane.xlu0 %1384 }
 0x2d1   :  { %v2497_v61 = vpop.eup %2496  ;;  %v1708_v62 = vadd.f32 1.0, %v2495_v58  ;;  %2522 = vpow2.f32 %v2029_v56  ;;  %v2030_v63 = vmul.f32 -1.442695, %v1460_v57  ;;  %v1465_v0 = vadd.f32 %v2923_v35, %v1385_v60 }
 0x2d2   :  { %v2499_v1 = vpop.eup %2498  ;;  %1893 = vst.msk [vmem:[%s3251_s7 + $0x108] sm:$0xff] %vm1859_vm0, %v2497_v61  ;;  %2524 = vrcp.f32 %v1707_v59  ;;  %v1387_v2 = vpop.xlane.xlu1 %1386 }
 0x2d3   :  { %v2501_v3 = vpop.eup %2500  ;;  %1898 = vst.msk [vmem:[%s3251_s7 + $0x130] sm:$0xff] %vm1859_vm0, %v2499_v1  ;;  %2526 = vrcp.f32 %v1708_v62  ;;  %v2035_v4 = vmul.f32 -1.442695, %v1465_v0  ;;  %v1466_v5 = vadd.f32 %v2923_v35, %v1387_v2 }
 0x2d4   :  { %v2503_v6 = vpop.eup %2502  ;;  %v1713_v7 = vadd.f32 1.0, %v2501_v3  ;;  %2528 = vpow2.f32 %v2030_v63  ;;  %v1381_v8 = vpop.xlane.xlu0 %1380 }
 0x2d5   :  { %v2505_v9 = vpop.eup %2504  ;;  %1899 = vst.msk [vmem:[%s3251_s7 + $0x138] sm:$0xff] %vm1859_vm0, %v2503_v6  ;;  %2530 = vpow2.f32 %v2035_v4  ;;  %v2036_v10 = vmul.f32 -1.442695, %v1466_v5  ;;  %v1463_v11 = vadd.f32 %v2923_v35, %v1381_v8  ;;  %v2594_v4 = vld [vmem:[#allocation2] ss:$0 sm:$0xff] }
 0x2d6   :  { %v2507_v12 = vpop.eup %2506  ;;  %2532 = vrcp.f32 %v1713_v7  ;;  %v1714_v13 = vadd.f32 1.0, %v2505_v9  ;;  %v1383_v14 = vpop.xlane.xlu1 %1382 }
 0x2d7   :  { %v2509_v15 = vpop.eup %2508  ;;  %1896 = vst.msk [vmem:[%s3251_s7 + $0x120] sm:$0xff] %vm1859_vm0, %v2507_v12  ;;  %2534 = vpow2.f32 %v2036_v10  ;;  %v2033_v16 = vmul.f32 -1.442695, %v1463_v11  ;;  %v1464_v17 = vadd.f32 %v2923_v35, %v1383_v14 }
 0x2d8   :  { %v2511_v18 = vpop.eup %2510  ;;  %2536 = vrcp.f32 %v1714_v13  ;;  %v1711_v19 = vadd.f32 1.0, %v2509_v15  ;;  %v1393_v20 = vpop.xlane.xlu0 %1392 }
 0x2d9   :  { %v2513_v21 = vpop.eup %2512  ;;  %v1712_v22 = vadd.f32 1.0, %v2511_v18  ;;  %2538 = vpow2.f32 %v2033_v16  ;;  %v2034_v23 = vmul.f32 -1.442695, %v1464_v17  ;;  %v1469_v24 = vadd.f32 %v2923_v35, %v1393_v20 }
 0x2da   :  { %v2515_v25 = vpop.eup %2514  ;;  %1897 = vst.msk [vmem:[%s3251_s7 + $0x128] sm:$0xff] %vm1859_vm0, %v2513_v21  ;;  %2540 = vrcp.f32 %v1711_v19  ;;  %v1395_v26 = vpop.xlane.xlu1 %1394 }
 0x2db   :  { %v2517_v27 = vpop.eup %2516  ;;  %2542 = vrcp.f32 %v1712_v22  ;;  %v1717_v29 = vadd.f32 1.0, %v2515_v25  ;;  %v2039_v30 = vmul.f32 -1.442695, %v1469_v24  ;;  %v1470_v31 = vadd.f32 %v2923_v35, %v1395_v26 }
 0x2dc   :  { %v2519_v32 = vpop.eup %2518  ;;  %1902 = vst.msk [vmem:[%s3251_s7 + $0x150] sm:$0xff] %vm1859_vm0, %v2517_v27  ;;  %2544 = vpow2.f32 %v2034_v23  ;;  %v1389_v33 = vpop.xlane.xlu0 %1388 }
 0x2dd   :  { %v2521_v34 = vpop.eup %2520  ;;  %2546 = vrcp.f32 %v1717_v29  ;;  %v1718_v36 = vadd.f32 1.0, %v2519_v32  ;;  %v2040_v51 = vmul.f32 -1.442695, %v1470_v31  ;;  %v1467_v37 = vadd.f32 %v2923_v35, %v1389_v33 }
 0x2de   :  { %v2523_v38 = vpop.eup %2522  ;;  %1903 = vst.msk [vmem:[%s3251_s7 + $0x158] sm:$0xff] %vm1859_vm0, %v2521_v34  ;;  %2548 = vpow2.f32 %v2039_v30  ;;  %v1391_v39 = vpop.xlane.xlu1 %1390 }
 0x2df   :  { %v2525_v40 = vpop.eup %2524  ;;  %2550 = vrcp.f32 %v1718_v36  ;;  %v1715_v41 = vadd.f32 1.0, %v2523_v38  ;;  %v2037_v42 = vmul.f32 -1.442695, %v1467_v37  ;;  %v1468_v43 = vadd.f32 %v2923_v35, %v1391_v39 }
 0x2e0   :  { %v2527_v44 = vpop.eup %2526  ;;  %1900 = vst.msk [vmem:[%s3251_s7 + $0x140] sm:$0xff] %vm1859_vm0, %v2525_v40  ;;  %2552 = vpow2.f32 %v2040_v51  ;;  %v1397_v28 = vpop.xlane.xlu0 %1396 }
 0x2e1   :  { %v2529_v45 = vpop.eup %2528  ;;  %1901 = vst.msk [vmem:[%s3251_s7 + $0x148] sm:$0xff] %vm1859_vm0, %v2527_v44  ;;  %2554 = vrcp.f32 %v1715_v41  ;;  %v2038_v46 = vmul.f32 -1.442695, %v1468_v43  ;;  %v1471_v47 = vadd.f32 %v2923_v35, %v1397_v28 }
 0x2e2   :  { %v2531_v48 = vpop.eup %2530  ;;  %v1716_v49 = vadd.f32 1.0, %v2529_v45  ;;  %2556 = vpow2.f32 %v2037_v42 }
 0x2e3   :  { %v2533_v50 = vpop.eup %2532  ;;  %v1721_v52 = vadd.f32 1.0, %v2531_v48  ;;  %2558 = vpow2.f32 %v2038_v46  ;;  %v2041_v53 = vmul.f32 -1.442695, %v1471_v47 }
 0x2e4   :  { %v2535_v54 = vpop.eup %2534  ;;  %1906 = vst.msk [vmem:[%s3251_s7 + $0x170] sm:$0xff] %vm1859_vm0, %v2533_v50  ;;  %2560 = vrcp.f32 %v1716_v49  ;;  %v1399_v55 = vpop.xlane.xlu1 %1398 }
 0x2e5   :  { %v1401_v56 = vpop.xlane.xlu0 %1400  ;;  %v2537_v57 = vpop.eup %2536  ;;  %2562 = vrcp.f32 %v1721_v52  ;;  %v1722_v58 = vadd.f32 1.0, %v2535_v54  ;;  %v1472_v59 = vadd.f32 %v2923_v35, %v1399_v55 }
 0x2e6   :  { %v1473_v60 = vadd.f32 %v2923_v35, %v1401_v56  ;;  %v2539_v61 = vpop.eup %2538  ;;  %1907 = vst.msk [vmem:[%s3251_s7 + $0x178] sm:$0xff] %vm1859_vm0, %v2537_v57  ;;  %2564 = vpow2.f32 %v2041_v53 }
 0x2e7   :  { %v2541_v62 = vpop.eup %2540  ;;  %2566 = vrcp.f32 %v1722_v58  ;;  %v1719_v63 = vadd.f32 1.0, %v2539_v61  ;;  %v2042_v0 = vmul.f32 -1.442695, %v1472_v59 }
 0x2e8   :  { %v2043_v1 = vmul.f32 -1.442695, %v1473_v60  ;;  %v2543_v2 = vpop.eup %2542  ;;  %1904 = vst.msk [vmem:[%s3251_s7 + $0x160] sm:$0xff] %vm1859_vm0, %v2541_v62  ;;  %v1403_v3 = vpop.xlane.xlu1 %1402 }
 0x2e9   :  { %v2545_v35 = vpop.eup %2544  ;;  %1905 = vst.msk [vmem:[%s3251_s7 + $0x168] sm:$0xff] %vm1859_vm0, %v2543_v2  ;;  %2568 = vrcp.f32 %v1719_v63  ;;  %v1474_v5 = vadd.f32 %v2594_v4, %v1403_v3 }
 0x2ea   :  { %v2547_v6 = vpop.eup %2546  ;;  %v1720_v7 = vadd.f32 1.0, %v2545_v35  ;;  %2570 = vpow2.f32 %v2042_v0 }
 0x2eb   :  { %v2549_v8 = vpop.eup %2548  ;;  %1910 = vst.msk [vmem:[%s3251_s7 + $0x190] sm:$0xff] %vm1859_vm0, %v2547_v6  ;;  %2572 = vpow2.f32 %v2043_v1  ;;  %v2044_v9 = vmul.f32 -1.442695, %v1474_v5 }
 0x2ec   :  { %v2551_v10 = vpop.eup %2550  ;;  %2574 = vrcp.f32 %v1720_v7  ;;  %v1725_v11 = vadd.f32 1.0, %v2549_v8 }
 0x2ed   :  { %v2553_v12 = vpop.eup %2552  ;;  %1911 = vst.msk [vmem:[%s3251_s7 + $0x198] sm:$0xff] %vm1859_vm0, %v2551_v10  ;;  %2576 = vpow2.f32 %v2044_v9 }
 0x2ee   :  { %v2555_v13 = vpop.eup %2554  ;;  %2578 = vrcp.f32 %v1725_v11  ;;  %v1726_v14 = vadd.f32 1.0, %v2553_v12 }
 0x2ef   :  { %v2557_v15 = vpop.eup %2556  ;;  %1908 = vst.msk [vmem:[%s3251_s7 + $0x180] sm:$0xff] %vm1859_vm0, %v2555_v13 }
 0x2f0   :  { %v2559_v16 = vpop.eup %2558  ;;  %2580 = vrcp.f32 %v1726_v14  ;;  %v1723_v17 = vadd.f32 1.0, %v2557_v15 }
 0x2f1   :  { %v2561_v18 = vpop.eup %2560  ;;  %v1724_v19 = vadd.f32 1.0, %v2559_v16 }
 0x2f2   :  { %v2563_v20 = vpop.eup %2562  ;;  %1909 = vst.msk [vmem:[%s3251_s7 + $0x188] sm:$0xff] %vm1859_vm0, %v2561_v18  ;;  %2582 = vrcp.f32 %v1723_v17 }
 0x2f3   :  { %v2565_v21 = vpop.eup %2564  ;;  %1914 = vst.msk [vmem:[%s3251_s7 + $0x1b0] sm:$0xff] %vm1859_vm0, %v2563_v20  ;;  %2584 = vrcp.f32 %v1724_v19 }
 0x2f4   :  { %v2567_v22 = vpop.eup %2566  ;;  %v1727_v23 = vadd.f32 1.0, %v2565_v21 }
 0x2f5   :  { %1915 = vst.msk [vmem:[%s3251_s7 + $0x1b8] sm:$0xff] %vm1859_vm0, %v2567_v22 }
 0x2f6   :  { %v2569_v24 = vpop.eup %2568  ;;  %2586 = vrcp.f32 %v1727_v23 }
 0x2f7   :  { %v2571_v25 = vpop.eup %2570  ;;  %1912 = vst.msk [vmem:[%s3251_s7 + $0x1a0] sm:$0xff] %vm1859_vm0, %v2569_v24 }
 0x2f8   :  { %v2573_v26 = vpop.eup %2572  ;;  %v1728_v27 = vadd.f32 1.0, %v2571_v25 }
 0x2f9   :  { %v2575_v29 = vpop.eup %2574  ;;  %v1729_v30 = vadd.f32 1.0, %v2573_v26 }
 0x2fa   :  { %v2577_v31 = vpop.eup %2576  ;;  %1913 = vst.msk [vmem:[%s3251_s7 + $0x1a8] sm:$0xff] %vm1859_vm0, %v2575_v29  ;;  %2588 = vrcp.f32 %v1728_v27 }
 0x2fb   :  { %v2579_v32 = vpop.eup %2578  ;;  %2590 = vrcp.f32 %v1729_v30  ;;  %v1730_v33 = vadd.f32 1.0, %v2577_v31 }
 0x2fc   :  { %1918 = vst.msk [vmem:[%s3251_s7 + $0x1d0] sm:$0xff] %vm1859_vm0, %v2579_v32 }
 0x2fd   :  { %v2581_v34 = vpop.eup %2580  ;;  %2592 = vrcp.f32 %v1730_v33 }
 0x2fe   :  { %1919 = vst.msk [vmem:[%s3251_s7 + $0x1d8] sm:$0xff] %vm1859_vm0, %v2581_v34 }
 0x2ff   :  { %v2583_v36 = vpop.eup %2582 }
 0x300   :  { %v2585_v51 = vpop.eup %2584  ;;  %1916 = vst.msk [vmem:[%s3251_s7 + $0x1c0] sm:$0xff] %vm1859_vm0, %v2583_v36 }
 0x301   :  { %1917 = vst.msk [vmem:[%s3251_s7 + $0x1c8] sm:$0xff] %vm1859_vm0, %v2585_v51 }
 0x303   :  { %v2587_v37 = vpop.eup %2586 }
 0x304   :  { %1920 = vst.msk [vmem:[%s3251_s7 + $0x1e0] sm:$0xff] %vm1859_vm0, %v2587_v37 }
 0x307   :  { %v2589_v38 = vpop.eup %2588 }
 0x308   :  { %v2591_v39 = vpop.eup %2590  ;;  %1921 = vst.msk [vmem:[%s3251_s7 + $0x1e8] sm:$0xff] %vm1859_vm0, %v2589_v38 }
 0x309   :  { %1922 = vst.msk [vmem:[%s3251_s7 + $0x1f0] sm:$0xff] %vm1859_vm0, %v2591_v39 }
 0x30a   :  { %v2593_v40 = vpop.eup %2592 }
 0x30b   :  { %1923 = vst.msk [vmem:[%s3251_s7 + $0x1f8] sm:$0xff] %vm1859_vm0, %v2593_v40 }
 0x30c   :  { %1928 = vsyncpa [#allocation4], 1 }
 0x30d   :  { %1929 = vsyncpa [#allocation6], 1 }

</bundles_post_ra>
